<compile_context>
chip_gen: v7x
topology: tpu7x:2x2x1
jax: 0.10.0
libtpu: 0.0.40
codegen_flags: <defaults>
</compile_context>

<pallas_src>
import math

import jax
import jax.numpy as jnp
import numpy as np
from jax.experimental import pallas as pl
from jax.experimental.pallas import tpu as pltpu


# --------------------------- fused GRU + Linear kernel ------------------------
def gru_decoder_kernel(bs_ref,           # SMEM (Tmax,) int32: valid batches per step
                       x_ref,            # (Tmax*B, E)  bf16 time-major inputs
                       wi_ref,           # (E, 3G)      bf16 fused input weights  [r|z|n]
                       wh_ref,           # (G, 3G)      bf16 fused hidden weights [r|z|n]
                       bi_ref,           # (1, 3G)      f32  fused input bias (+ bhr,bhz folded)
                       bhn_ref,          # (1, G)       f32  hidden bias of the n gate
                       wlin_ref,         # (G, Opad)    bf16 output Linear (lane-padded)
                       blin_ref,         # (1, Opad)    f32
                       h_out_ref,        # (Tmax*B, G)  f32 hidden trajectory (lane-padded)
                       y_out_ref,        # (Tmax*B, Opad) f32 Linear(hiddens)
                       g_scr):           # VMEM (Tmax*B, 3G) f32 precomputed input gates
    Tmax = bs_ref.shape[0]
    TB = x_ref.shape[0]
    B = TB // Tmax
    G = bhn_ref.shape[1]                  # lane-padded gate / hidden width (128)

    # Input projection for ALL timesteps at once (no sequential dependency):
    # one (Tmax*B, E) x (E, 3G) bf16 matmul, f32 accumulate, bias folded in.
    g_scr[...] = (jnp.dot(x_ref[...], wi_ref[...],
                          preferred_element_type=jnp.float32) + bi_ref[...])

    wh = wh_ref[...]                      # resident bf16 weights for the recurrence
    bhn = bhn_ref[...]
    # Hoisted broadcast (JAX does not CSE broadcast_in_dim inside the loop).
    row_ids = jax.lax.broadcasted_iota(jnp.int32, (B, G), 0)

    def step(t, h_prev):
        off = pl.multiple_of(t * B, B)                 # sublane-aligned dynamic offset
        g_t = g_scr[pl.ds(off, B), :]                  # (B, 3G) precomputed x-gates
        hg = jnp.dot(h_prev.astype(jnp.bfloat16), wh,
                     preferred_element_type=jnp.float32)   # (B, 3G), no bias needed
        # r and z in a single EUP push over the lane-aligned [0, 2G) window.
        rz = jax.nn.sigmoid(g_t[:, 0:2 * G] + hg[:, 0:2 * G])
        r = rz[:, 0:G]
        z = rz[:, G:2 * G]
        n = jnp.tanh(g_t[:, 2 * G:3 * G] + r * (hg[:, 2 * G:3 * G] + bhn))
        h_new = n + z * (h_prev - n)                   # == (1-z)*n + z*h_prev
        # pack_padded_sequence semantics: at step t only the first bs_ref[t]
        # (length-sorted) batch rows advance; finished/padded rows stay frozen.
        h_t = jnp.where(row_ids < bs_ref[t], h_new, h_prev)
        h_out_ref[pl.ds(off, B), :] = h_t              # lane-dense store, no scratch copy
        return h_t

    h0 = jnp.zeros((B, G), dtype=jnp.float32)
    jax.lax.fori_loop(0, Tmax, step, h0, unroll=min(Tmax, 8))

    # Fused output Linear over the resident hidden trajectory; Opad is a
    # multiple of 128 -> lane-dense stores.
    h_all = h_out_ref[...]
    y_out_ref[...] = (jnp.dot(h_all.astype(jnp.bfloat16), wlin_ref[...],
                              preferred_element_type=jnp.float32) + blin_ref[...])


def run_decoder(x_flat, batch_sizes, params):
    TB, E = x_flat.shape
    Hpad, threeG = params["wh"].shape
    G = params["bhn"].shape[1]
    Opad = params["wlin"].shape[1]

    grid_spec = pltpu.PrefetchScalarGridSpec(
        num_scalar_prefetch=1,              # batch_sizes -> SMEM
        grid=(1,),                          # whole sequence in one grid step
        in_specs=[
            pl.BlockSpec((TB, E), lambda i, bs: (0, 0)),
            pl.BlockSpec((E, threeG), lambda i, bs: (0, 0)),
            pl.BlockSpec((Hpad, threeG), lambda i, bs: (0, 0)),
            pl.BlockSpec((1, threeG), lambda i, bs: (0, 0)),
            pl.BlockSpec((1, G), lambda i, bs: (0, 0)),
            pl.BlockSpec((Hpad, Opad), lambda i, bs: (0, 0)),
            pl.BlockSpec((1, Opad), lambda i, bs: (0, 0)),
        ],
        out_specs=[
            pl.BlockSpec((TB, Hpad), lambda i, bs: (0, 0)),
            pl.BlockSpec((TB, Opad), lambda i, bs: (0, 0)),
        ],
        scratch_shapes=[pltpu.VMEM((TB, threeG), jnp.float32)],
    )
    return pl.pallas_call(
        gru_decoder_kernel,
        out_shape=(jax.ShapeDtypeStruct((TB, Hpad), jnp.float32),
                   jax.ShapeDtypeStruct((TB, Opad), jnp.float32)),
        grid_spec=grid_spec,
        compiler_params=pltpu.CompilerParams(
            dimension_semantics=("arbitrary",)),   # single sequential grid step
    )(batch_sizes, x_flat,
      params["wi"], params["wh"], params["bi"], params["bhn"],
      params["wlin"], params["blin"])


# ----------------------------- full forward (glue + kernel) -------------------
def bahdanau_decoder_forward(features, captions, lengths, params, sublane=8):
    """features: (B, E) f32; captions: (B, T) int32; lengths: python list, desc."""
    B_real = features.shape[0]
    O = params["embedding"].shape[0]
    H = params["w_lin_ref"].shape[0]       # unpadded hidden size

    assert all(lengths[i] >= lengths[i + 1] for i in range(len(lengths) - 1)), \
        "pack_padded_sequence requires lengths sorted descending"

    # TODO(synk): embedding lookup and the packed-sequence gather (dynamic,
    # length-dependent shapes) are left as XLA glue around the Pallas kernel.
    emb = jnp.take(params["embedding"], captions, axis=0)           # (B, T, E)
    x = jnp.concatenate([features[:, None, :], emb], axis=1)        # (B, T+1, E)
    Tmax = x.shape[1]
    assert max(lengths) <= Tmax

    # Pad batch up to a sublane multiple; padded rows are masked (length 0).
    B_pad = max(sublane, ((B_real + sublane - 1) // sublane) * sublane)
    x = jnp.pad(x, ((0, B_pad - B_real), (0, 0), (0, 0)))
    x_flat = jnp.transpose(x, (1, 0, 2)).reshape(Tmax * B_pad, -1)  # time-major
    x_flat = x_flat.astype(jnp.bfloat16)                            # MXU-native operand

    # pack_padded_sequence batch sizes (lengths sorted descending)
    bs_list = [sum(1 for l in lengths if l > t) for t in range(Tmax)]
    batch_sizes = jnp.asarray(bs_list, dtype=jnp.int32)

    h_flat, y_flat = run_decoder(x_flat, batch_sizes, params)

    # packed-sequence ordering gather (static glue)
    flat_idx = jnp.asarray(
        [t * B_pad + b for t in range(Tmax) for b in range(B_real) if lengths[b] > t],
        dtype=jnp.int32)
    packed_h = h_flat[flat_idx][:, :H]                              # (N, H)
    outputs = y_flat[flat_idx][:, :O]                               # (N, O)
    packed_batch_sizes = jnp.asarray([b for b in bs_list if b > 0], jnp.int32)
    return outputs, packed_h, packed_batch_sizes


# ----------------------------- pure-JAX reference -----------------------------
def gru_ref(x_tm, lengths_padded, p):
    """Unfused GRU reference with the same bf16-operand / f32-accumulate precision."""
    Tmax, B, _ = x_tm.shape
    H = p["wh_ref"].shape[0]
    bi, bh = p["bi_ref"], p["bh_ref"]
    wi = p["wi_ref"].astype(jnp.bfloat16)
    wh = p["wh_ref"].astype(jnp.bfloat16)
    h = jnp.zeros((B, H), jnp.float32)
    outs = []
    for t in range(Tmax):
        gi = jnp.dot(x_tm[t].astype(jnp.bfloat16), wi,
                     preferred_element_type=jnp.float32) + bi
        gh = jnp.dot(h.astype(jnp.bfloat16), wh,
                     preferred_element_type=jnp.float32) + bh
        r = jax.nn.sigmoid(gi[:, :H] + gh[:, :H])
        z = jax.nn.sigmoid(gi[:, H:2 * H] + gh[:, H:2 * H])
        n = jnp.tanh(gi[:, 2 * H:] + r * gh[:, 2 * H:])
        h_new = (1.0 - z) * n + z * h
        mask = (t < lengths_padded)[:, None]
        h = jnp.where(mask, h_new, h)
        outs.append(h)
    return jnp.stack(outs)


# ----------------------------- parameter construction -------------------------
def init_params(key, hidden_size, embed_size, output_size, lane=128):
    ks = jax.random.split(key, 7)
    H, E, O = hidden_size, embed_size, output_size
    G = ((H + lane - 1) // lane) * lane           # lane-padded gate / hidden width
    Opad = ((O + lane - 1) // lane) * lane

    embedding = jax.random.normal(ks[0], (O, E), jnp.float32) * 0.1

    # PyTorch GRU layout: weight_ih (3H, E), weight_hh (3H, H); gate order r,z,n
    w_ih = jax.random.normal(ks[1], (3 * H, E), jnp.float32) * (1.0 / math.sqrt(H))
    w_hh = jax.random.normal(ks[2], (3 * H, H), jnp.float32) * (1.0 / math.sqrt(H))
    b_ih = jax.random.normal(ks[3], (3 * H,), jnp.float32) * 0.05
    b_hh = jax.random.normal(ks[4], (3 * H,), jnp.float32) * 0.05

    w_lin = jax.random.normal(ks[5], (O, H), jnp.float32) * (1.0 / math.sqrt(H))
    b_lin = jax.random.normal(ks[6], (O,), jnp.float32) * 0.05

    # Lane-aligned fused gate layout: gate g in {r,z,n} occupies lanes
    # [g*G, g*G + H); padded lanes / rows are zero so they never affect results.
    wi_pad = jnp.zeros((E, 3 * G), jnp.float32)
    wh_pad = jnp.zeros((G, 3 * G), jnp.float32)
    for g in range(3):
        wi_pad = wi_pad.at[:, g * G:g * G + H].set(w_ih[g * H:(g + 1) * H, :].T)
        wh_pad = wh_pad.at[:H, g * G:g * G + H].set(w_hh[g * H:(g + 1) * H, :].T)
    # Fold bhr, bhz into the input bias (they add outside r*(...)); keep bhn apart.
    bi_pad = jnp.zeros((1, 3 * G), jnp.float32)
    bi_pad = bi_pad.at[0, 0:H].set(b_ih[0:H] + b_hh[0:H])
    bi_pad = bi_pad.at[0, G:G + H].set(b_ih[H:2 * H] + b_hh[H:2 * H])
    bi_pad = bi_pad.at[0, 2 * G:2 * G + H].set(b_ih[2 * H:3 * H])
    bhn_pad = jnp.zeros((1, G), jnp.float32).at[0, :H].set(b_hh[2 * H:3 * H])

    # Lane-padded output Linear so the kernel's y store is lane-dense.
    wlin_pad = jnp.zeros((G, Opad), jnp.float32).at[:H, :O].set(w_lin.T)
    blin_pad = jnp.zeros((1, Opad), jnp.float32).at[0, :O].set(b_lin)

    return {
        "embedding": embedding,
        # fused, lane-aligned, bf16 MXU operands; biases stay f32
        "wi": wi_pad.astype(jnp.bfloat16),    # (E, 3G)
        "wh": wh_pad.astype(jnp.bfloat16),    # (G, 3G)
        "bi": bi_pad,                          # (1, 3G)
        "bhn": bhn_pad,                        # (1, G)
        "wlin": wlin_pad.astype(jnp.bfloat16), # (G, Opad)
        "blin": blin_pad,                      # (1, Opad)
        # unpadded/unfused copies for the pure-JAX reference
        "wi_ref": w_ih.T,                      # (E, 3H)
        "wh_ref": w_hh.T,                      # (H, 3H)
        "bi_ref": b_ih,                        # (3H,)
        "bh_ref": b_hh,                        # (3H,)
        "w_lin_ref": w_lin.T,                  # (H, O)
        "b_lin_ref": b_lin,                    # (O,)
    }


if __name__ == "__main__":
    hidden_size, embed_size, output_size = 32, 16, 40
    B, T = 4, 7
    Tmax = T + 1
    lengths = [8, 6, 5, 3]          # sorted descending, as pack_padded_sequence requires

    key = jax.random.PRNGKey(0)
    kp, kf, kc = jax.random.split(key, 3)
    params = init_params(kp, hidden_size, embed_size, output_size)

    features = jax.random.normal(kf, (B, embed_size), jnp.float32)
    captions = jax.random.randint(kc, (B, T), 0, output_size, dtype=jnp.int32)

    outputs, packed_h, batch_sizes = bahdanau_decoder_forward(
        features, captions, lengths, params)
    jax.block_until_ready((outputs, packed_h))

    # cross-check against pure-JAX reference (same bf16-operand precision)
    B_pad = 8
    emb = jnp.take(params["embedding"], captions, axis=0)
    x = jnp.concatenate([features[:, None, :], emb], axis=1)
    x = jnp.pad(x, ((0, B_pad - B), (0, 0), (0, 0)))
    x_tm = jnp.transpose(x, (1, 0, 2)).astype(jnp.float32)
    lengths_padded = jnp.asarray(lengths + [0] * (B_pad - B), jnp.int32)
    h_ref = gru_ref(x_tm, lengths_padded, params)
    flat_idx = [t * B_pad + b for t in range(Tmax) for b in range(B) if lengths[b] > t]
    packed_ref = h_ref.reshape(Tmax * B_pad, -1)[jnp.asarray(flat_idx)]
    out_ref = jnp.dot(packed_ref.astype(jnp.bfloat16),
                      params["w_lin_ref"].astype(jnp.bfloat16),
                      preferred_element_type=jnp.float32) + params["b_lin_ref"]

    assert outputs.shape == (sum(lengths), output_size)
    assert packed_h.shape == (sum(lengths), hidden_size)
    np.testing.assert_allclose(np.asarray(packed_h), np.asarray(packed_ref),
                               rtol=5e-3, atol=5e-3)
    np.testing.assert_allclose(np.asarray(outputs), np.asarray(out_ref),
                               rtol=5e-3, atol=5e-3)
    print("KERNEL_OK")
</pallas_src>

<mosaic_0001>
module attributes {stable_mosaic.version = 11 : i64} {
  func.func @gru_decoder_kernel(%arg0: i32, %arg1: memref<8xi32, #tpu.memory_space<smem>>, %arg2: memref<64x16xbf16, #tpu.memory_space<vmem>>, %arg3: memref<16x384xbf16, #tpu.memory_space<vmem>>, %arg4: memref<128x384xbf16, #tpu.memory_space<vmem>>, %arg5: memref<1x384xf32, #tpu.memory_space<vmem>>, %arg6: memref<1x128xf32, #tpu.memory_space<vmem>>, %arg7: memref<128x128xbf16, #tpu.memory_space<vmem>>, %arg8: memref<1x128xf32, #tpu.memory_space<vmem>>, %arg9: memref<64x128xf32, #tpu.memory_space<vmem>>, %arg10: memref<64x128xf32, #tpu.memory_space<vmem>>, %arg11: memref<64x384xf32, #tpu.memory_space<vmem>>) attributes {dimension_semantics = [#tpu.dimension_semantics<arbitrary>], iteration_bounds = array<i64: 1>, scalar_prefetch = 1 : i64, scratch_operands = 1 : i64, tpu.core_type = #tpu.core_type<tc>, window_params = [{pipeline_mode = #tpu.pipeline_mode<synchronous>, transform_indices = @transform_0, window_bounds = array<i64: 64, 16>}, {pipeline_mode = #tpu.pipeline_mode<synchronous>, transform_indices = @transform_1, window_bounds = array<i64: 16, 384>}, {pipeline_mode = #tpu.pipeline_mode<synchronous>, transform_indices = @transform_2, window_bounds = array<i64: 128, 384>}, {pipeline_mode = #tpu.pipeline_mode<synchronous>, transform_indices = @transform_3, window_bounds = array<i64: 1, 384>}, {pipeline_mode = #tpu.pipeline_mode<synchronous>, transform_indices = @transform_4, window_bounds = array<i64: 1, 128>}, {pipeline_mode = #tpu.pipeline_mode<synchronous>, transform_indices = @transform_5, window_bounds = array<i64: 128, 128>}, {pipeline_mode = #tpu.pipeline_mode<synchronous>, transform_indices = @transform_6, window_bounds = array<i64: 1, 128>}, {pipeline_mode = #tpu.pipeline_mode<synchronous>, transform_indices = @transform_7, window_bounds = array<i64: 64, 128>}, {pipeline_mode = #tpu.pipeline_mode<synchronous>, transform_indices = @transform_8, window_bounds = array<i64: 64, 128>}]} {
    %c0 = arith.constant 0 : index
    %c0_0 = arith.constant 0 : index
    %0 = vector.load %arg2[%c0, %c0_0] : memref<64x16xbf16, #tpu.memory_space<vmem>>, vector<64x16xbf16>
    %c0_1 = arith.constant 0 : index
    %c0_2 = arith.constant 0 : index
    %1 = vector.load %arg3[%c0_1, %c0_2] : memref<16x384xbf16, #tpu.memory_space<vmem>>, vector<16x384xbf16>
    %cst = arith.constant dense<0.000000e+00> : vector<64x384xf32>
    %2 = tpu.matmul %0, %1, %cst {dimension_numbers = #tpu.dot_dimension_numbers<[1], [0], [0], [1], [0, 0, 1, 1], [], []>} : vector<64x16xbf16>, vector<16x384xbf16>, vector<64x384xf32> -> vector<64x384xf32>
    %c0_3 = arith.constant 0 : index
    %c0_4 = arith.constant 0 : index
    %3 = vector.load %arg5[%c0_3, %c0_4] : memref<1x384xf32, #tpu.memory_space<vmem>>, vector<1x384xf32>
    %4 = vector.broadcast %3 : vector<1x384xf32> to vector<64x384xf32>
    %5 = arith.addf %2, %4 : vector<64x384xf32>
    %c0_5 = arith.constant 0 : index
    %c0_6 = arith.constant 0 : index
    %6 = vector.load %arg11[%c0_5, %c0_6] : memref<64x384xf32, #tpu.memory_space<vmem>>, vector<64x384xf32>
    tpu.vector_store %arg11[%c0_5, %c0_6], %5 {strides = array<i32>} : memref<64x384xf32, #tpu.memory_space<vmem>>, vector<64x384xf32>,
    %c0_7 = arith.constant 0 : index
    %c0_8 = arith.constant 0 : index
    %7 = vector.load %arg4[%c0_7, %c0_8] : memref<128x384xbf16, #tpu.memory_space<vmem>>, vector<128x384xbf16>
    %c0_9 = arith.constant 0 : index
    %c0_10 = arith.constant 0 : index
    %8 = vector.load %arg6[%c0_9, %c0_10] : memref<1x128xf32, #tpu.memory_space<vmem>>, vector<1x128xf32>
    %9 = tpu.iota {dimensions = array<i32: 0>} : vector<8x128xi32>
    %cst_11 = arith.constant 0.000000e+00 : f32
    %10 = vector.broadcast %cst_11 : f32 to vector<8x128xf32>
    %c0_i32 = arith.constant 0 : i32
    %c8_i32 = arith.constant 8 : i32
    %11 = arith.muli %c0_i32, %c8_i32 : i32
    %12 = tpu.assume_multiple %11, 8 : i32
    %13 = arith.index_cast %12 : i32 to index
    %c0_12 = arith.constant 0 : index
    %14 = vector.load %arg11[%13, %c0_12] : memref<64x384xf32, #tpu.memory_space<vmem>>, vector<8x384xf32>
    %15 = arith.truncf %10 : vector<8x128xf32> to vector<8x128xbf16>
    %cst_13 = arith.constant dense<0.000000e+00> : vector<8x384xf32>
    %16 = tpu.matmul %15, %7, %cst_13 {dimension_numbers = #tpu.dot_dimension_numbers<[1], [0], [0], [1], [0, 0, 1, 1], [], []>} : vector<8x128xbf16>, vector<128x384xbf16>, vector<8x384xf32> -> vector<8x384xf32>
    %17 = vector.extract_strided_slice %14 {offsets = [0, 0], sizes = [8, 256], strides = [1, 1]} : vector<8x384xf32> to vector<8x256xf32>
    %18 = vector.extract_strided_slice %16 {offsets = [0, 0], sizes = [8, 256], strides = [1, 1]} : vector<8x384xf32> to vector<8x256xf32>
    %19 = arith.addf %17, %18 : vector<8x256xf32>
    %20 = arith.negf %19 : vector<8x256xf32>
    %21 = math.exp %20 : vector<8x256xf32>
    %cst_14 = arith.constant 1.000000e+00 : f32
    %22 = vector.broadcast %cst_14 : f32 to vector<8x256xf32>
    %23 = arith.addf %22, %21 : vector<8x256xf32>
    %24 = arith.divf %22, %23 : vector<8x256xf32>
    %25 = vector.extract_strided_slice %24 {offsets = [0, 0], sizes = [8, 128], strides = [1, 1]} : vector<8x256xf32> to vector<8x128xf32>
    %26 = vector.extract_strided_slice %24 {offsets = [0, 128], sizes = [8, 128], strides = [1, 1]} : vector<8x256xf32> to vector<8x128xf32>
    %27 = vector.extract_strided_slice %14 {offsets = [0, 256], sizes = [8, 128], strides = [1, 1]} : vector<8x384xf32> to vector<8x128xf32>
    %28 = vector.extract_strided_slice %16 {offsets = [0, 256], sizes = [8, 128], strides = [1, 1]} : vector<8x384xf32> to vector<8x128xf32>
    %29 = vector.broadcast %8 : vector<1x128xf32> to vector<8x128xf32>
    %30 = arith.addf %28, %29 : vector<8x128xf32>
    %31 = arith.mulf %25, %30 : vector<8x128xf32>
    %32 = arith.addf %27, %31 : vector<8x128xf32>
    %33 = math.tanh %32 : vector<8x128xf32>
    %34 = arith.subf %10, %33 : vector<8x128xf32>
    %35 = arith.mulf %26, %34 : vector<8x128xf32>
    %36 = arith.addf %33, %35 : vector<8x128xf32>
    %37 = arith.index_cast %c0_i32 : i32 to index
    %38 = memref.load %arg1[%37] : memref<8xi32, #tpu.memory_space<smem>>
    %39 = vector.broadcast %38 : i32 to vector<8x128xi32>
    %40 = arith.cmpi slt, %9, %39 : vector<8x128xi32>
    %41 = arith.select %40, %36, %10 : vector<8x128xi1>, vector<8x128xf32>
    %42 = arith.index_cast %12 : i32 to index
    %c0_15 = arith.constant 0 : index
    %43 = vector.load %arg9[%42, %c0_15] : memref<64x128xf32, #tpu.memory_space<vmem>>, vector<8x128xf32>
    tpu.vector_store %arg9[%42, %c0_15], %41 {strides = array<i32>} : memref<64x128xf32, #tpu.memory_space<vmem>>, vector<8x128xf32>,
    %c1_i32 = arith.constant 1 : i32
    %c8_i32_16 = arith.constant 8 : i32
    %44 = arith.muli %c1_i32, %c8_i32_16 : i32
    %45 = tpu.assume_multiple %44, 8 : i32
    %46 = arith.index_cast %45 : i32 to index
    %c0_17 = arith.constant 0 : index
    %47 = vector.load %arg11[%46, %c0_17] : memref<64x384xf32, #tpu.memory_space<vmem>>, vector<8x384xf32>
    %48 = arith.truncf %41 : vector<8x128xf32> to vector<8x128xbf16>
    %cst_18 = arith.constant dense<0.000000e+00> : vector<8x384xf32>
    %49 = tpu.matmul %48, %7, %cst_18 {dimension_numbers = #tpu.dot_dimension_numbers<[1], [0], [0], [1], [0, 0, 1, 1], [], []>} : vector<8x128xbf16>, vector<128x384xbf16>, vector<8x384xf32> -> vector<8x384xf32>
    %50 = vector.extract_strided_slice %47 {offsets = [0, 0], sizes = [8, 256], strides = [1, 1]} : vector<8x384xf32> to vector<8x256xf32>
    %51 = vector.extract_strided_slice %49 {offsets = [0, 0], sizes = [8, 256], strides = [1, 1]} : vector<8x384xf32> to vector<8x256xf32>
    %52 = arith.addf %50, %51 : vector<8x256xf32>
    %53 = arith.negf %52 : vector<8x256xf32>
    %54 = math.exp %53 : vector<8x256xf32>
    %cst_19 = arith.constant 1.000000e+00 : f32
    %55 = vector.broadcast %cst_19 : f32 to vector<8x256xf32>
    %56 = arith.addf %55, %54 : vector<8x256xf32>
    %57 = arith.divf %55, %56 : vector<8x256xf32>
    %58 = vector.extract_strided_slice %57 {offsets = [0, 0], sizes = [8, 128], strides = [1, 1]} : vector<8x256xf32> to vector<8x128xf32>
    %59 = vector.extract_strided_slice %57 {offsets = [0, 128], sizes = [8, 128], strides = [1, 1]} : vector<8x256xf32> to vector<8x128xf32>
    %60 = vector.extract_strided_slice %47 {offsets = [0, 256], sizes = [8, 128], strides = [1, 1]} : vector<8x384xf32> to vector<8x128xf32>
    %61 = vector.extract_strided_slice %49 {offsets = [0, 256], sizes = [8, 128], strides = [1, 1]} : vector<8x384xf32> to vector<8x128xf32>
    %62 = vector.broadcast %8 : vector<1x128xf32> to vector<8x128xf32>
    %63 = arith.addf %61, %62 : vector<8x128xf32>
    %64 = arith.mulf %58, %63 : vector<8x128xf32>
    %65 = arith.addf %60, %64 : vector<8x128xf32>
    %66 = math.tanh %65 : vector<8x128xf32>
    %67 = arith.subf %41, %66 : vector<8x128xf32>
    %68 = arith.mulf %59, %67 : vector<8x128xf32>
    %69 = arith.addf %66, %68 : vector<8x128xf32>
    %70 = arith.index_cast %c1_i32 : i32 to index
    %71 = memref.load %arg1[%70] : memref<8xi32, #tpu.memory_space<smem>>
    %72 = vector.broadcast %71 : i32 to vector<8x128xi32>
    %73 = arith.cmpi slt, %9, %72 : vector<8x128xi32>
    %74 = arith.select %73, %69, %41 : vector<8x128xi1>, vector<8x128xf32>
    %75 = arith.index_cast %45 : i32 to index
    %c0_20 = arith.constant 0 : index
    %76 = vector.load %arg9[%75, %c0_20] : memref<64x128xf32, #tpu.memory_space<vmem>>, vector<8x128xf32>
    tpu.vector_store %arg9[%75, %c0_20], %74 {strides = array<i32>} : memref<64x128xf32, #tpu.memory_space<vmem>>, vector<8x128xf32>,
    %c2_i32 = arith.constant 2 : i32
    %c8_i32_21 = arith.constant 8 : i32
    %77 = arith.muli %c2_i32, %c8_i32_21 : i32
    %78 = tpu.assume_multiple %77, 8 : i32
    %79 = arith.index_cast %78 : i32 to index
    %c0_22 = arith.constant 0 : index
    %80 = vector.load %arg11[%79, %c0_22] : memref<64x384xf32, #tpu.memory_space<vmem>>, vector<8x384xf32>
    %81 = arith.truncf %74 : vector<8x128xf32> to vector<8x128xbf16>
    %cst_23 = arith.constant dense<0.000000e+00> : vector<8x384xf32>
    %82 = tpu.matmul %81, %7, %cst_23 {dimension_numbers = #tpu.dot_dimension_numbers<[1], [0], [0], [1], [0, 0, 1, 1], [], []>} : vector<8x128xbf16>, vector<128x384xbf16>, vector<8x384xf32> -> vector<8x384xf32>
    %83 = vector.extract_strided_slice %80 {offsets = [0, 0], sizes = [8, 256], strides = [1, 1]} : vector<8x384xf32> to vector<8x256xf32>
    %84 = vector.extract_strided_slice %82 {offsets = [0, 0], sizes = [8, 256], strides = [1, 1]} : vector<8x384xf32> to vector<8x256xf32>
    %85 = arith.addf %83, %84 : vector<8x256xf32>
    %86 = arith.negf %85 : vector<8x256xf32>
    %87 = math.exp %86 : vector<8x256xf32>
    %cst_24 = arith.constant 1.000000e+00 : f32
    %88 = vector.broadcast %cst_24 : f32 to vector<8x256xf32>
    %89 = arith.addf %88, %87 : vector<8x256xf32>
    %90 = arith.divf %88, %89 : vector<8x256xf32>
    %91 = vector.extract_strided_slice %90 {offsets = [0, 0], sizes = [8, 128], strides = [1, 1]} : vector<8x256xf32> to vector<8x128xf32>
    %92 = vector.extract_strided_slice %90 {offsets = [0, 128], sizes = [8, 128], strides = [1, 1]} : vector<8x256xf32> to vector<8x128xf32>
    %93 = vector.extract_strided_slice %80 {offsets = [0, 256], sizes = [8, 128], strides = [1, 1]} : vector<8x384xf32> to vector<8x128xf32>
    %94 = vector.extract_strided_slice %82 {offsets = [0, 256], sizes = [8, 128], strides = [1, 1]} : vector<8x384xf32> to vector<8x128xf32>
    %95 = vector.broadcast %8 : vector<1x128xf32> to vector<8x128xf32>
    %96 = arith.addf %94, %95 : vector<8x128xf32>
    %97 = arith.mulf %91, %96 : vector<8x128xf32>
    %98 = arith.addf %93, %97 : vector<8x128xf32>
    %99 = math.tanh %98 : vector<8x128xf32>
    %100 = arith.subf %74, %99 : vector<8x128xf32>
    %101 = arith.mulf %92, %100 : vector<8x128xf32>
    %102 = arith.addf %99, %101 : vector<8x128xf32>
    %103 = arith.index_cast %c2_i32 : i32 to index
    %104 = memref.load %arg1[%103] : memref<8xi32, #tpu.memory_space<smem>>
    %105 = vector.broadcast %104 : i32 to vector<8x128xi32>
    %106 = arith.cmpi slt, %9, %105 : vector<8x128xi32>
    %107 = arith.select %106, %102, %74 : vector<8x128xi1>, vector<8x128xf32>
    %108 = arith.index_cast %78 : i32 to index
    %c0_25 = arith.constant 0 : index
    %109 = vector.load %arg9[%108, %c0_25] : memref<64x128xf32, #tpu.memory_space<vmem>>, vector<8x128xf32>
    tpu.vector_store %arg9[%108, %c0_25], %107 {strides = array<i32>} : memref<64x128xf32, #tpu.memory_space<vmem>>, vector<8x128xf32>,
    %c3_i32 = arith.constant 3 : i32
    %c8_i32_26 = arith.constant 8 : i32
    %110 = arith.muli %c3_i32, %c8_i32_26 : i32
    %111 = tpu.assume_multiple %110, 8 : i32
    %112 = arith.index_cast %111 : i32 to index
    %c0_27 = arith.constant 0 : index
    %113 = vector.load %arg11[%112, %c0_27] : memref<64x384xf32, #tpu.memory_space<vmem>>, vector<8x384xf32>
    %114 = arith.truncf %107 : vector<8x128xf32> to vector<8x128xbf16>
    %cst_28 = arith.constant dense<0.000000e+00> : vector<8x384xf32>
    %115 = tpu.matmul %114, %7, %cst_28 {dimension_numbers = #tpu.dot_dimension_numbers<[1], [0], [0], [1], [0, 0, 1, 1], [], []>} : vector<8x128xbf16>, vector<128x384xbf16>, vector<8x384xf32> -> vector<8x384xf32>
    %116 = vector.extract_strided_slice %113 {offsets = [0, 0], sizes = [8, 256], strides = [1, 1]} : vector<8x384xf32> to vector<8x256xf32>
    %117 = vector.extract_strided_slice %115 {offsets = [0, 0], sizes = [8, 256], strides = [1, 1]} : vector<8x384xf32> to vector<8x256xf32>
    %118 = arith.addf %116, %117 : vector<8x256xf32>
    %119 = arith.negf %118 : vector<8x256xf32>
    %120 = math.exp %119 : vector<8x256xf32>
    %cst_29 = arith.constant 1.000000e+00 : f32
    %121 = vector.broadcast %cst_29 : f32 to vector<8x256xf32>
    %122 = arith.addf %121, %120 : vector<8x256xf32>
    %123 = arith.divf %121, %122 : vector<8x256xf32>
    %124 = vector.extract_strided_slice %123 {offsets = [0, 0], sizes = [8, 128], strides = [1, 1]} : vector<8x256xf32> to vector<8x128xf32>
    %125 = vector.extract_strided_slice %123 {offsets = [0, 128], sizes = [8, 128], strides = [1, 1]} : vector<8x256xf32> to vector<8x128xf32>
    %126 = vector.extract_strided_slice %113 {offsets = [0, 256], sizes = [8, 128], strides = [1, 1]} : vector<8x384xf32> to vector<8x128xf32>
    %127 = vector.extract_strided_slice %115 {offsets = [0, 256], sizes = [8, 128], strides = [1, 1]} : vector<8x384xf32> to vector<8x128xf32>
    %128 = vector.broadcast %8 : vector<1x128xf32> to vector<8x128xf32>
    %129 = arith.addf %127, %128 : vector<8x128xf32>
    %130 = arith.mulf %124, %129 : vector<8x128xf32>
    %131 = arith.addf %126, %130 : vector<8x128xf32>
    %132 = math.tanh %131 : vector<8x128xf32>
    %133 = arith.subf %107, %132 : vector<8x128xf32>
    %134 = arith.mulf %125, %133 : vector<8x128xf32>
    %135 = arith.addf %132, %134 : vector<8x128xf32>
    %136 = arith.index_cast %c3_i32 : i32 to index
    %137 = memref.load %arg1[%136] : memref<8xi32, #tpu.memory_space<smem>>
    %138 = vector.broadcast %137 : i32 to vector<8x128xi32>
    %139 = arith.cmpi slt, %9, %138 : vector<8x128xi32>
    %140 = arith.select %139, %135, %107 : vector<8x128xi1>, vector<8x128xf32>
    %141 = arith.index_cast %111 : i32 to index
    %c0_30 = arith.constant 0 : index
    %142 = vector.load %arg9[%141, %c0_30] : memref<64x128xf32, #tpu.memory_space<vmem>>, vector<8x128xf32>
    tpu.vector_store %arg9[%141, %c0_30], %140 {strides = array<i32>} : memref<64x128xf32, #tpu.memory_space<vmem>>, vector<8x128xf32>,
    %c4_i32 = arith.constant 4 : i32
    %c8_i32_31 = arith.constant 8 : i32
    %143 = arith.muli %c4_i32, %c8_i32_31 : i32
    %144 = tpu.assume_multiple %143, 8 : i32
    %145 = arith.index_cast %144 : i32 to index
    %c0_32 = arith.constant 0 : index
    %146 = vector.load %arg11[%145, %c0_32] : memref<64x384xf32, #tpu.memory_space<vmem>>, vector<8x384xf32>
    %147 = arith.truncf %140 : vector<8x128xf32> to vector<8x128xbf16>
    %cst_33 = arith.constant dense<0.000000e+00> : vector<8x384xf32>
    %148 = tpu.matmul %147, %7, %cst_33 {dimension_numbers = #tpu.dot_dimension_numbers<[1], [0], [0], [1], [0, 0, 1, 1], [], []>} : vector<8x128xbf16>, vector<128x384xbf16>, vector<8x384xf32> -> vector<8x384xf32>
    %149 = vector.extract_strided_slice %146 {offsets = [0, 0], sizes = [8, 256], strides = [1, 1]} : vector<8x384xf32> to vector<8x256xf32>
    %150 = vector.extract_strided_slice %148 {offsets = [0, 0], sizes = [8, 256], strides = [1, 1]} : vector<8x384xf32> to vector<8x256xf32>
    %151 = arith.addf %149, %150 : vector<8x256xf32>
    %152 = arith.negf %151 : vector<8x256xf32>
    %153 = math.exp %152 : vector<8x256xf32>
    %cst_34 = arith.constant 1.000000e+00 : f32
    %154 = vector.broadcast %cst_34 : f32 to vector<8x256xf32>
    %155 = arith.addf %154, %153 : vector<8x256xf32>
    %156 = arith.divf %154, %155 : vector<8x256xf32>
    %157 = vector.extract_strided_slice %156 {offsets = [0, 0], sizes = [8, 128], strides = [1, 1]} : vector<8x256xf32> to vector<8x128xf32>
    %158 = vector.extract_strided_slice %156 {offsets = [0, 128], sizes = [8, 128], strides = [1, 1]} : vector<8x256xf32> to vector<8x128xf32>
    %159 = vector.extract_strided_slice %146 {offsets = [0, 256], sizes = [8, 128], strides = [1, 1]} : vector<8x384xf32> to vector<8x128xf32>
    %160 = vector.extract_strided_slice %148 {offsets = [0, 256], sizes = [8, 128], strides = [1, 1]} : vector<8x384xf32> to vector<8x128xf32>
    %161 = vector.broadcast %8 : vector<1x128xf32> to vector<8x128xf32>
    %162 = arith.addf %160, %161 : vector<8x128xf32>
    %163 = arith.mulf %157, %162 : vector<8x128xf32>
    %164 = arith.addf %159, %163 : vector<8x128xf32>
    %165 = math.tanh %164 : vector<8x128xf32>
    %166 = arith.subf %140, %165 : vector<8x128xf32>
    %167 = arith.mulf %158, %166 : vector<8x128xf32>
    %168 = arith.addf %165, %167 : vector<8x128xf32>
    %169 = arith.index_cast %c4_i32 : i32 to index
    %170 = memref.load %arg1[%169] : memref<8xi32, #tpu.memory_space<smem>>
    %171 = vector.broadcast %170 : i32 to vector<8x128xi32>
    %172 = arith.cmpi slt, %9, %171 : vector<8x128xi32>
    %173 = arith.select %172, %168, %140 : vector<8x128xi1>, vector<8x128xf32>
    %174 = arith.index_cast %144 : i32 to index
    %c0_35 = arith.constant 0 : index
    %175 = vector.load %arg9[%174, %c0_35] : memref<64x128xf32, #tpu.memory_space<vmem>>, vector<8x128xf32>
    tpu.vector_store %arg9[%174, %c0_35], %173 {strides = array<i32>} : memref<64x128xf32, #tpu.memory_space<vmem>>, vector<8x128xf32>,
    %c5_i32 = arith.constant 5 : i32
    %c8_i32_36 = arith.constant 8 : i32
    %176 = arith.muli %c5_i32, %c8_i32_36 : i32
    %177 = tpu.assume_multiple %176, 8 : i32
    %178 = arith.index_cast %177 : i32 to index
    %c0_37 = arith.constant 0 : index
    %179 = vector.load %arg11[%178, %c0_37] : memref<64x384xf32, #tpu.memory_space<vmem>>, vector<8x384xf32>
    %180 = arith.truncf %173 : vector<8x128xf32> to vector<8x128xbf16>
    %cst_38 = arith.constant dense<0.000000e+00> : vector<8x384xf32>
    %181 = tpu.matmul %180, %7, %cst_38 {dimension_numbers = #tpu.dot_dimension_numbers<[1], [0], [0], [1], [0, 0, 1, 1], [], []>} : vector<8x128xbf16>, vector<128x384xbf16>, vector<8x384xf32> -> vector<8x384xf32>
    %182 = vector.extract_strided_slice %179 {offsets = [0, 0], sizes = [8, 256], strides = [1, 1]} : vector<8x384xf32> to vector<8x256xf32>
    %183 = vector.extract_strided_slice %181 {offsets = [0, 0], sizes = [8, 256], strides = [1, 1]} : vector<8x384xf32> to vector<8x256xf32>
    %184 = arith.addf %182, %183 : vector<8x256xf32>
    %185 = arith.negf %184 : vector<8x256xf32>
    %186 = math.exp %185 : vector<8x256xf32>
    %cst_39 = arith.constant 1.000000e+00 : f32
    %187 = vector.broadcast %cst_39 : f32 to vector<8x256xf32>
    %188 = arith.addf %187, %186 : vector<8x256xf32>
    %189 = arith.divf %187, %188 : vector<8x256xf32>
    %190 = vector.extract_strided_slice %189 {offsets = [0, 0], sizes = [8, 128], strides = [1, 1]} : vector<8x256xf32> to vector<8x128xf32>
    %191 = vector.extract_strided_slice %189 {offsets = [0, 128], sizes = [8, 128], strides = [1, 1]} : vector<8x256xf32> to vector<8x128xf32>
    %192 = vector.extract_strided_slice %179 {offsets = [0, 256], sizes = [8, 128], strides = [1, 1]} : vector<8x384xf32> to vector<8x128xf32>
    %193 = vector.extract_strided_slice %181 {offsets = [0, 256], sizes = [8, 128], strides = [1, 1]} : vector<8x384xf32> to vector<8x128xf32>
    %194 = vector.broadcast %8 : vector<1x128xf32> to vector<8x128xf32>
    %195 = arith.addf %193, %194 : vector<8x128xf32>
    %196 = arith.mulf %190, %195 : vector<8x128xf32>
    %197 = arith.addf %192, %196 : vector<8x128xf32>
    %198 = math.tanh %197 : vector<8x128xf32>
    %199 = arith.subf %173, %198 : vector<8x128xf32>
    %200 = arith.mulf %191, %199 : vector<8x128xf32>
    %201 = arith.addf %198, %200 : vector<8x128xf32>
    %202 = arith.index_cast %c5_i32 : i32 to index
    %203 = memref.load %arg1[%202] : memref<8xi32, #tpu.memory_space<smem>>
    %204 = vector.broadcast %203 : i32 to vector<8x128xi32>
    %205 = arith.cmpi slt, %9, %204 : vector<8x128xi32>
    %206 = arith.select %205, %201, %173 : vector<8x128xi1>, vector<8x128xf32>
    %207 = arith.index_cast %177 : i32 to index
    %c0_40 = arith.constant 0 : index
    %208 = vector.load %arg9[%207, %c0_40] : memref<64x128xf32, #tpu.memory_space<vmem>>, vector<8x128xf32>
    tpu.vector_store %arg9[%207, %c0_40], %206 {strides = array<i32>} : memref<64x128xf32, #tpu.memory_space<vmem>>, vector<8x128xf32>,
    %c6_i32 = arith.constant 6 : i32
    %c8_i32_41 = arith.constant 8 : i32
    %209 = arith.muli %c6_i32, %c8_i32_41 : i32
    %210 = tpu.assume_multiple %209, 8 : i32
    %211 = arith.index_cast %210 : i32 to index
    %c0_42 = arith.constant 0 : index
    %212 = vector.load %arg11[%211, %c0_42] : memref<64x384xf32, #tpu.memory_space<vmem>>, vector<8x384xf32>
    %213 = arith.truncf %206 : vector<8x128xf32> to vector<8x128xbf16>
    %cst_43 = arith.constant dense<0.000000e+00> : vector<8x384xf32>
    %214 = tpu.matmul %213, %7, %cst_43 {dimension_numbers = #tpu.dot_dimension_numbers<[1], [0], [0], [1], [0, 0, 1, 1], [], []>} : vector<8x128xbf16>, vector<128x384xbf16>, vector<8x384xf32> -> vector<8x384xf32>
    %215 = vector.extract_strided_slice %212 {offsets = [0, 0], sizes = [8, 256], strides = [1, 1]} : vector<8x384xf32> to vector<8x256xf32>
    %216 = vector.extract_strided_slice %214 {offsets = [0, 0], sizes = [8, 256], strides = [1, 1]} : vector<8x384xf32> to vector<8x256xf32>
    %217 = arith.addf %215, %216 : vector<8x256xf32>
    %218 = arith.negf %217 : vector<8x256xf32>
    %219 = math.exp %218 : vector<8x256xf32>
    %cst_44 = arith.constant 1.000000e+00 : f32
    %220 = vector.broadcast %cst_44 : f32 to vector<8x256xf32>
    %221 = arith.addf %220, %219 : vector<8x256xf32>
    %222 = arith.divf %220, %221 : vector<8x256xf32>
    %223 = vector.extract_strided_slice %222 {offsets = [0, 0], sizes = [8, 128], strides = [1, 1]} : vector<8x256xf32> to vector<8x128xf32>
    %224 = vector.extract_strided_slice %222 {offsets = [0, 128], sizes = [8, 128], strides = [1, 1]} : vector<8x256xf32> to vector<8x128xf32>
    %225 = vector.extract_strided_slice %212 {offsets = [0, 256], sizes = [8, 128], strides = [1, 1]} : vector<8x384xf32> to vector<8x128xf32>
    %226 = vector.extract_strided_slice %214 {offsets = [0, 256], sizes = [8, 128], strides = [1, 1]} : vector<8x384xf32> to vector<8x128xf32>
    %227 = vector.broadcast %8 : vector<1x128xf32> to vector<8x128xf32>
    %228 = arith.addf %226, %227 : vector<8x128xf32>
    %229 = arith.mulf %223, %228 : vector<8x128xf32>
    %230 = arith.addf %225, %229 : vector<8x128xf32>
    %231 = math.tanh %230 : vector<8x128xf32>
    %232 = arith.subf %206, %231 : vector<8x128xf32>
    %233 = arith.mulf %224, %232 : vector<8x128xf32>
    %234 = arith.addf %231, %233 : vector<8x128xf32>
    %235 = arith.index_cast %c6_i32 : i32 to index
    %236 = memref.load %arg1[%235] : memref<8xi32, #tpu.memory_space<smem>>
    %237 = vector.broadcast %236 : i32 to vector<8x128xi32>
    %238 = arith.cmpi slt, %9, %237 : vector<8x128xi32>
    %239 = arith.select %238, %234, %206 : vector<8x128xi1>, vector<8x128xf32>
    %240 = arith.index_cast %210 : i32 to index
    %c0_45 = arith.constant 0 : index
    %241 = vector.load %arg9[%240, %c0_45] : memref<64x128xf32, #tpu.memory_space<vmem>>, vector<8x128xf32>
    tpu.vector_store %arg9[%240, %c0_45], %239 {strides = array<i32>} : memref<64x128xf32, #tpu.memory_space<vmem>>, vector<8x128xf32>,
    %c7_i32 = arith.constant 7 : i32
    %c8_i32_46 = arith.constant 8 : i32
    %242 = arith.muli %c7_i32, %c8_i32_46 : i32
    %243 = tpu.assume_multiple %242, 8 : i32
    %244 = arith.index_cast %243 : i32 to index
    %c0_47 = arith.constant 0 : index
    %245 = vector.load %arg11[%244, %c0_47] : memref<64x384xf32, #tpu.memory_space<vmem>>, vector<8x384xf32>
    %246 = arith.truncf %239 : vector<8x128xf32> to vector<8x128xbf16>
    %cst_48 = arith.constant dense<0.000000e+00> : vector<8x384xf32>
    %247 = tpu.matmul %246, %7, %cst_48 {dimension_numbers = #tpu.dot_dimension_numbers<[1], [0], [0], [1], [0, 0, 1, 1], [], []>} : vector<8x128xbf16>, vector<128x384xbf16>, vector<8x384xf32> -> vector<8x384xf32>
    %248 = vector.extract_strided_slice %245 {offsets = [0, 0], sizes = [8, 256], strides = [1, 1]} : vector<8x384xf32> to vector<8x256xf32>
    %249 = vector.extract_strided_slice %247 {offsets = [0, 0], sizes = [8, 256], strides = [1, 1]} : vector<8x384xf32> to vector<8x256xf32>
    %250 = arith.addf %248, %249 : vector<8x256xf32>
    %251 = arith.negf %250 : vector<8x256xf32>
    %252 = math.exp %251 : vector<8x256xf32>
    %cst_49 = arith.constant 1.000000e+00 : f32
    %253 = vector.broadcast %cst_49 : f32 to vector<8x256xf32>
    %254 = arith.addf %253, %252 : vector<8x256xf32>
    %255 = arith.divf %253, %254 : vector<8x256xf32>
    %256 = vector.extract_strided_slice %255 {offsets = [0, 0], sizes = [8, 128], strides = [1, 1]} : vector<8x256xf32> to vector<8x128xf32>
    %257 = vector.extract_strided_slice %255 {offsets = [0, 128], sizes = [8, 128], strides = [1, 1]} : vector<8x256xf32> to vector<8x128xf32>
    %258 = vector.extract_strided_slice %245 {offsets = [0, 256], sizes = [8, 128], strides = [1, 1]} : vector<8x384xf32> to vector<8x128xf32>
    %259 = vector.extract_strided_slice %247 {offsets = [0, 256], sizes = [8, 128], strides = [1, 1]} : vector<8x384xf32> to vector<8x128xf32>
    %260 = vector.broadcast %8 : vector<1x128xf32> to vector<8x128xf32>
    %261 = arith.addf %259, %260 : vector<8x128xf32>
    %262 = arith.mulf %256, %261 : vector<8x128xf32>
    %263 = arith.addf %258, %262 : vector<8x128xf32>
    %264 = math.tanh %263 : vector<8x128xf32>
    %265 = arith.subf %239, %264 : vector<8x128xf32>
    %266 = arith.mulf %257, %265 : vector<8x128xf32>
    %267 = arith.addf %264, %266 : vector<8x128xf32>
    %268 = arith.index_cast %c7_i32 : i32 to index
    %269 = memref.load %arg1[%268] : memref<8xi32, #tpu.memory_space<smem>>
    %270 = vector.broadcast %269 : i32 to vector<8x128xi32>
    %271 = arith.cmpi slt, %9, %270 : vector<8x128xi32>
    %272 = arith.select %271, %267, %239 : vector<8x128xi1>, vector<8x128xf32>
    %273 = arith.index_cast %243 : i32 to index
    %c0_50 = arith.constant 0 : index
    %274 = vector.load %arg9[%273, %c0_50] : memref<64x128xf32, #tpu.memory_space<vmem>>, vector<8x128xf32>
    tpu.vector_store %arg9[%273, %c0_50], %272 {strides = array<i32>} : memref<64x128xf32, #tpu.memory_space<vmem>>, vector<8x128xf32>,
    %c8_i32_51 = arith.constant 8 : i32
    %c0_52 = arith.constant 0 : index
    %c0_53 = arith.constant 0 : index
    %275 = vector.load %arg9[%c0_52, %c0_53] : memref<64x128xf32, #tpu.memory_space<vmem>>, vector<64x128xf32>
    %276 = arith.truncf %275 : vector<64x128xf32> to vector<64x128xbf16>
    %c0_54 = arith.constant 0 : index
    %c0_55 = arith.constant 0 : index
    %277 = vector.load %arg7[%c0_54, %c0_55] : memref<128x128xbf16, #tpu.memory_space<vmem>>, vector<128x128xbf16>
    %cst_56 = arith.constant dense<0.000000e+00> : vector<64x128xf32>
    %278 = tpu.matmul %276, %277, %cst_56 {dimension_numbers = #tpu.dot_dimension_numbers<[1], [0], [0], [1], [0, 0, 1, 1], [], []>} : vector<64x128xbf16>, vector<128x128xbf16>, vector<64x128xf32> -> vector<64x128xf32>
    %c0_57 = arith.constant 0 : index
    %c0_58 = arith.constant 0 : index
    %279 = vector.load %arg8[%c0_57, %c0_58] : memref<1x128xf32, #tpu.memory_space<vmem>>, vector<1x128xf32>
    %280 = vector.broadcast %279 : vector<1x128xf32> to vector<64x128xf32>
    %281 = arith.addf %278, %280 : vector<64x128xf32>
    %c0_59 = arith.constant 0 : index
    %c0_60 = arith.constant 0 : index
    %282 = vector.load %arg10[%c0_59, %c0_60] : memref<64x128xf32, #tpu.memory_space<vmem>>, vector<64x128xf32>
    tpu.vector_store %arg10[%c0_59, %c0_60], %281 {strides = array<i32>} : memref<64x128xf32, #tpu.memory_space<vmem>>, vector<64x128xf32>,
    return
  }
  func.func @transform_0(%arg0: i32, %arg1: memref<8xi32, #tpu.memory_space<smem>>) -> (i32, i32) {
    %c0_i32 = arith.constant 0 : i32
    %c0_i32_0 = arith.constant 0 : i32
    %c0_i32_1 = arith.constant 0 : i32
    return %c0_i32, %c0_i32_0 : i32, i32
  }
  func.func @transform_1(%arg0: i32, %arg1: memref<8xi32, #tpu.memory_space<smem>>) -> (i32, i32) {
    %c0_i32 = arith.constant 0 : i32
    %c0_i32_0 = arith.constant 0 : i32
    %c0_i32_1 = arith.constant 0 : i32
    return %c0_i32, %c0_i32_0 : i32, i32
  }
  func.func @transform_2(%arg0: i32, %arg1: memref<8xi32, #tpu.memory_space<smem>>) -> (i32, i32) {
    %c0_i32 = arith.constant 0 : i32
    %c0_i32_0 = arith.constant 0 : i32
    %c0_i32_1 = arith.constant 0 : i32
    return %c0_i32, %c0_i32_0 : i32, i32
  }
  func.func @transform_3(%arg0: i32, %arg1: memref<8xi32, #tpu.memory_space<smem>>) -> (i32, i32) {
    %c0_i32 = arith.constant 0 : i32
    %c0_i32_0 = arith.constant 0 : i32
    %c0_i32_1 = arith.constant 0 : i32
    return %c0_i32, %c0_i32_0 : i32, i32
  }
  func.func @transform_4(%arg0: i32, %arg1: memref<8xi32, #tpu.memory_space<smem>>) -> (i32, i32) {
    %c0_i32 = arith.constant 0 : i32
    %c0_i32_0 = arith.constant 0 : i32
    %c0_i32_1 = arith.constant 0 : i32
    return %c0_i32, %c0_i32_0 : i32, i32
  }
  func.func @transform_5(%arg0: i32, %arg1: memref<8xi32, #tpu.memory_space<smem>>) -> (i32, i32) {
    %c0_i32 = arith.constant 0 : i32
    %c0_i32_0 = arith.constant 0 : i32
    %c0_i32_1 = arith.constant 0 : i32
    return %c0_i32, %c0_i32_0 : i32, i32
  }
  func.func @transform_6(%arg0: i32, %arg1: memref<8xi32, #tpu.memory_space<smem>>) -> (i32, i32) {
    %c0_i32 = arith.constant 0 : i32
    %c0_i32_0 = arith.constant 0 : i32
    %c0_i32_1 = arith.constant 0 : i32
    return %c0_i32, %c0_i32_0 : i32, i32
  }
  func.func @transform_7(%arg0: i32, %arg1: memref<8xi32, #tpu.memory_space<smem>>) -> (i32, i32) {
    %c0_i32 = arith.constant 0 : i32
    %c0_i32_0 = arith.constant 0 : i32
    %c0_i32_1 = arith.constant 0 : i32
    return %c0_i32, %c0_i32_0 : i32, i32
  }
  func.func @transform_8(%arg0: i32, %arg1: memref<8xi32, #tpu.memory_space<smem>>) -> (i32, i32) {
    %c0_i32 = arith.constant 0 : i32
    %c0_i32_0 = arith.constant 0 : i32
    %c0_i32_1 = arith.constant 0 : i32
    return %c0_i32, %c0_i32_0 : i32, i32
  }
}

</mosaic_0001>

<bundles_post_ra>
// kernel: tpu_custom_call.1
= control target key start
LH: loop header
LB: loop body
LE: loop exit
PB: predicated region body
PF: predicated region fallthrough
CT: control target
= control target key end

     0   :  { %s2899_s0 = inlined_call_operand.vmem [shape: s32[8], index: 0, kind: input, shape index: {}]   ;;  %s2900_s1 = inlined_call_operand.vmem [shape: bf16[64,16], index: 1, kind: input, shape index: {}]   ;;  %s2901_s2 = inlined_call_operand.vmem [shape: bf16[16,384], index: 2, kind: input, shape index: {}]   ;;  %s2902_s3 = inlined_call_operand.hbm [shape: bf16[128,384], index: 3, kind: input, shape index: {}]   ;;  %s2903_s4 = inlined_call_operand.vmem [shape: f32[1,384], index: 4, kind: input, shape index: {}]   ;;  %s2904_s5 = inlined_call_operand.vmem [shape: f32[1,128], index: 5, kind: input, shape index: {}]   ;;  %s2905_s6 = inlined_call_operand.hbm [shape: bf16[128,128], index: 6, kind: input, shape index: {}]   ;;  %s2906_s7 = inlined_call_operand.vmem [shape: f32[1,128], index: 7, kind: input, shape index: {}]   ;;  %s2907_s8 = inlined_call_operand.hbm [shape: f32[64,128], index: 8, kind: output, shape index: {0}]   ;;  %s2908_s9 = inlined_call_operand.hbm [shape: f32[64,128], index: 9, kind: output, shape index: {1}]  }
   0x1   :  { %s15_s11 = sshll.u32 %s2899_s0, 4  ;;  %s16_s11 = int_to_ptr.vmem [resolvable:$true] %s15_s11 }
   0x2   :  { %s2115_s12 = scalar_lea.vmem %s16_s11, 16  ;;  %p2120_p1 = scmp.lt.s32.totalorder %s16_s11, %s16_s11 }
   0x3   :  { %p2116_p0 = scmp.ne.s32.totalorder %s16_s11, %s2115_s12  ;;  %p2121_p2 = scmp.lt.s32.totalorder %s2115_s12, %s2115_s12 }
   0x5   :  { %p2122_p3 = por %p2121_p2, %p2120_p1 }
   0x7   :  { %p2123_p4 = pnand %p2122_p3, %p2116_p0 }
   0x9   :  { %2126 = shalt.err (!%p2123_p4)  }
   0xa   :  { %s2225_s13 = smov [#allocation4]  }
   0xb   :  { %18 = dma.vmem_to_smem %s16_s11, 16, %s2225_s13, [#allocation3] }
   0xc   :  { %2215 = dma.done.wait [#allocation3], 16 }
   0xd   :  { %2216 = vsyncadd [#allocation3], 4294967280 }
   0xe   :  { %20 = sfence }
   0xf   :  { %21 = vsyncpa [#allocation6], 0 }
  0x10   :  { %22 = vsyncpa [#allocation9], 0 }
  0x11   :  { %23 = vsyncpa [#allocation7], 0 }
  0x12   :  { %24 = vsyncpa [#allocation12], 0  ;;  %s2226_s14 = smov [#allocation5]   ;;  %s2127_s17 = scalar_lea.hbm %s2902_s3, 3072 }
  0x13   :  { %s34_s15 = sshll.u32 %s2226_s14, 4  ;;  %p2128_p5 = scmp.ne.s32.totalorder %s2902_s3, %s2127_s17  ;;  %s35_s15 = int_to_ptr.vmem [resolvable:$true] %s34_s15 }
  0x14   :  { %p2131_p6 = scmp.lt.u32.totalorder %s2127_s17, %s2902_s3 }
  0x16   :  { %p2133_p7 = pnand %p2131_p6, %p2128_p5 }
  0x18   :  { %2136 = shalt.err (!%p2133_p7)
}
  0x19   :  { %s2137_s22 = scalar_lea.vmem %s35_s15, 3072  ;;  %p2142_p9 = scmp.lt.s32.totalorder %s35_s15, %s35_s15 }
  0x1a   :  { %p2138_p8 = scmp.ne.s32.totalorder %s35_s15, %s2137_s22  ;;  %p2143_p10 = scmp.lt.s32.totalorder %s2137_s22, %s2137_s22 }
  0x1c   :  { %p2144_p11 = por %p2143_p10, %p2142_p9 }
  0x1e   :  { %p2145_p12 = pnand %p2144_p11, %p2138_p8 }
  0x20   :  { %2148 = shalt.err (!%p2145_p12)
}
  0x21   :  { %s2227_s23 = smov 192   ;;  %s2228_s24 = smov 12  }
  0x22   :  { %40 = dma.hbm_to_vmem [thread:$0]  %s2902_s3, 3072, %s35_s15, [#allocation6], %s2227_s23, %s2227_s23, %s2228_s24  }
  0x23   :  { %s2229_s27 = smov [#allocation8]   ;;  %s2149_s10 = scalar_lea.hbm %s2905_s6, 1024 }
  0x24   :  { %s50_s28 = sshll.u32 %s2229_s27, 4  ;;  %p2150_p13 = scmp.ne.s32.totalorder %s2905_s6, %s2149_s10  ;;  %s51_s28 = int_to_ptr.vmem [resolvable:$true] %s50_s28 }
  0x25   :  { %p2153_p0 = scmp.lt.u32.totalorder %s2149_s10, %s2905_s6 }
  0x27   :  { %p2155_p1 = pnand %p2153_p0, %p2150_p13 }
  0x29   :  { %2158 = shalt.err (!%p2155_p1)
}
  0x2a   :  { %s2159_s0 = scalar_lea.vmem %s51_s28, 1024  ;;  %p2164_p3 = scmp.lt.s32.totalorder %s51_s28, %s51_s28 }
  0x2b   :  { %p2160_p2 = scmp.ne.s32.totalorder %s51_s28, %s2159_s0  ;;  %p2165_p4 = scmp.lt.s32.totalorder %s2159_s0, %s2159_s0 }
  0x2d   :  { %p2166_p5 = por %p2165_p4, %p2164_p3 }
  0x2f   :  { %p2167_p6 = pnand %p2166_p5, %p2160_p2 }
  0x31   :  { %2170 = shalt.err (!%p2167_p6)
}
  0x32   :  { %s2230_s3 = smov 64   ;;  %s2231_s15 = smov 4  }
  0x33   :  { %56 = dma.hbm_to_vmem [thread:$0]  %s2905_s6, 1024, %s51_s28, [#allocation9], %s2230_s3, %s2230_s3, %s2231_s15  }
  0x34   :  { %2217 = dma.done.wait [#allocation6], 3072  }
  0x35   :  { %2218 = vsyncadd [#allocation6], 4294964224 }
  0x36   :  { %2219 = dma.done.wait [#allocation9], 1024  }
  0x37   :  { %2220 = vsyncadd [#allocation9], 4294966272  ;;  %v2909_v0 = vmov 0   ;;  %vm131_vm0 = vcmask 130048   ;;  %v1965_v1 = vld [vmem:[%s2901_s2 + $0x8] ss:$12 sps:$4 sm:$0xff]   ;;  %v80_v33 = vlaneseq }
  0x38   :  { %176 = vmatprep.mubr.bf16.mxu0 %v2909_v0  ;;  %v1966_v2 = vld [vmem:[%s2900_s1] sm:$0xff]   ;;  %1757 = vmatprep.subr.bf16.mxu1 %v1965_v1  ;;  %v1967_v3 = vld [vmem:[%s2900_s1 + $0x8] sm:$0xff]   ;;  %v2342_v9 = vld [vmem:[#allocation5 + $0x30] ss:$12 sps:$4 sm:$0xff]   ;;  %v2911_v25 = vmov 0.0   ;;  %vm2234_vm1 = vmmov 0  }
  0x39   :  { %1758 = vmatpush3.bf16.msra.mxu1 %v1965_v1  ;;  %1759 = vmatprep.mubr.msk.bf16.mxu1 %vm131_vm0, %v1966_v2  ;;  %v2328_v4 = vld [vmem:[#allocation5 + $0x4] ss:$12 sps:$4 sm:$0xff]   ;;  %v2330_v5 = vld [vmem:[#allocation5] ss:$12 sps:$4 sm:$0xff]   ;;  %v2333_v6 = vld [vmem:[#allocation5 + $0x1c] ss:$12 sps:$4 sm:$0xff]  }
  0x3a   :  { %475 = vmatprep.subr.bf16.mxu1 %v2328_v4  ;;  %v2337_v7 = vld [vmem:[#allocation5 + $0x18] ss:$12 sps:$4 sm:$0xff]   ;;  %v2340_v8 = vld [vmem:[#allocation5 + $0x34] ss:$12 sps:$4 sm:$0xff]   ;;  %v2374_v18 = vld [vmem:[#allocation5 + $0x7c] ss:$12 sps:$4 sm:$0xff]  }
  0x3b   :  { %v2345_v10 = vld [vmem:[#allocation5 + $0x4c] ss:$12 sps:$4 sm:$0xff]   ;;  %v1985_v11 = vld [vmem:[%s2900_s1 + $0x10] sm:$0xff]   ;;  %v2472_v34 = vshrl.u32 %v80_v33, 7  ;;  %v78_v36 = vld [vmem:[%s2903_s4] sm:$0x7] }
  0x3c   :  { %1760 = vmatmul.mubr.msk.bf16.vlgmr.msra.gmra.mrb[0].mxu1 %vm131_vm0, %v1967_v3  ;;  %v1987_v12 = vld [vmem:[%s2900_s1 + $0x18] sm:$0xff]   ;;  %v2355_v13 = vld [vmem:[#allocation5 + $0x48] ss:$12 sps:$4 sm:$0xff]   ;;  %v1991_v14 = vld [vmem:[%s2901_s2 + $0x4] ss:$12 sps:$4 sm:$0xff]   ;;  %s583_s11 = sld [smem:[#allocation4]] }
  0x3d   :  { %476 = vmatpush1.bf16.msra.mxu1 %v2330_v5  ;;  %1763 = vmatprep.mubr.msk.bf16.mxu1 %vm131_vm0, %v1985_v11  ;;  %v1993_v15 = vld [vmem:[%s2901_s2] ss:$12 sps:$4 sm:$0xff]   ;;  %v2367_v16 = vld [vmem:[#allocation5 + $0x64] ss:$12 sps:$4 sm:$0xff]   ;;  %v2398_v23 = vld [vmem:[#allocation5 + $0xa8] ss:$12 sps:$4 sm:$0xff]  }
  0x3e   :  { %477 = vmatprep.subr.bf16.mxu1 %v2333_v6  ;;  %144 = vmatprep.subr.bf16.mxu0 %v1991_v14  ;;  %v2370_v17 = vld [vmem:[#allocation5 + $0x60] ss:$12 sps:$4 sm:$0xff]   ;;  %v2380_v19 = vld [vmem:[#allocation5 + $0x78] ss:$12 sps:$4 sm:$0xff]   ;;  %v2386_v21 = vld [vmem:[#allocation5 + $0x90] ss:$12 sps:$4 sm:$0xff]  }
  0x3f   :  { %145 = vmatpush1.bf16.msra.mxu0 %v1993_v15  ;;  %v2384_v20 = vld [vmem:[#allocation5 + $0x94] ss:$12 sps:$4 sm:$0xff]   ;;  %v2388_v22 = vld [vmem:[#allocation5 + $0xac] ss:$12 sps:$4 sm:$0xff]   ;;  %v2429_v28 = vld [vmem:[#allocation5 + $0x50] ss:$12 sps:$4 sm:$0xff]  }
  0x40   :  { %595 = vmatprep.subr.bf16.mxu0 %v2328_v4  ;;  %v2404_v24 = vld [vmem:[#allocation5 + $0x8] ss:$12 sps:$4 sm:$0xff]   ;;  %v2412_v26 = vld [vmem:[#allocation5 + $0x20] ss:$12 sps:$4 sm:$0xff]   ;;  %v2421_v27 = vld [vmem:[#allocation5 + $0x38] ss:$12 sps:$4 sm:$0xff]  }
  0x41   :  { %478 = vmatpush1.bf16.msra.mxu1 %v2337_v7  ;;  %v2435_v29 = vld [vmem:[#allocation5 + $0x68] ss:$12 sps:$4 sm:$0xff]   ;;  %v2440_v30 = vld [vmem:[#allocation5 + $0x80] ss:$12 sps:$4 sm:$0xff]   ;;  %v2444_v31 = vld [vmem:[#allocation5 + $0x98] ss:$12 sps:$4 sm:$0xff]  }
  0x42   :  { %479 = vmatprep.subr.bf16.mxu1 %v2340_v8  ;;  %1597 = vmatmul.mubr.msk.bf16.vlgmr.msra.gmra.mrb[0].mxu0 %vm131_vm0, %v1966_v2  ;;  %v2448_v32 = vld [vmem:[#allocation5 + $0xb0] ss:$12 sps:$4 sm:$0xff]   ;;  %v90_v35 = vsub.s32 2, %v2472_v34  ;;  %v82_v53 = vsub.s32 0, %v2472_v34  ;;  %v86_v54 = vsub.s32 1, %v2472_v34  ;;  %s1643_s12 = sld [smem:[#allocation4 + $0x2]] }
  0x43   :  { %596 = vmatpush1.bf16.msra.mxu0 %v2330_v5  ;;  %186 = vmatprep.mubr.bf16.mxu0 %v2909_v0  ;;  %s1646_s13 = sld [smem:[#allocation4 + $0x3]]  ;;  %s1649_s14 = sld [smem:[#allocation4 + $0x4]]  ;;  %vm2235_vm10 = vmmov 1  }
  0x44   :  { %1764 = vmatmul.mubr.msk.bf16.gmra.mrb[4].mxu1 %vm131_vm0, %v1987_v12  ;;  %597 = vmatprep.subr.bf16.mxu0 %v2333_v6  ;;  %v2478_v37 = vrot.slane %v78_v36, %v90_v35  ;;  %v83_v56 = vrot.slane %v78_v36, %v82_v53  ;;  %v87_v58 = vrot.slane %v78_v36, %v86_v54  ;;  %s1652_s0 = sld [smem:[#allocation4 + $0x5]]  ;;  %s1655_s3 = sld [smem:[#allocation4 + $0x6]] }
  0x45   :  { %480 = vmatpush1.bf16.msra.mxu1 %v2342_v9  ;;  %507 = vmatprep.mubr.bf16.mxu1 %v2909_v0  ;;  %s1658_s17 = sld [smem:[#allocation4 + $0x7]] }
  0x46   :  { %481 = vmatprep.subr.bf16.mxu1 %v2345_v10 }
  0x47   :  { %598 = vmatpush1.bf16.msra.mxu0 %v2337_v7 }
  0x48   :  { %599 = vmatprep.subr.bf16.mxu0 %v2340_v8 }
  0x49   :  { %482 = vmatpush1.bf16.msra.mxu1 %v2355_v13 }
  0x4a   :  { %483 = vmatprep.subr.bf16.mxu1 %v2367_v16  ;;  %1598 = vmatmul.mubr.msk.bf16.gmra.mrb[4].mxu0 %vm131_vm0, %v1967_v3 }
  0x4b   :  { %600 = vmatpush1.bf16.msra.mxu0 %v2342_v9  ;;  %196 = vmatprep.mubr.bf16.mxu0 %v2909_v0 }
  0x4c   :  { %601 = vmatprep.subr.bf16.mxu0 %v2345_v10 }
  0x4d   :  { %484 = vmatpush1.bf16.msra.mxu1 %v2370_v17 }
  0x4e   :  { %485 = vmatprep.subr.bf16.mxu1 %v2374_v18 }
  0x4f   :  { %602 = vmatpush1.bf16.msra.mxu0 %v2355_v13 }
  0x50   :  { %603 = vmatprep.subr.bf16.mxu0 %v2367_v16 }
  0x51   :  { %486 = vmatpush1.bf16.msra.mxu1 %v2380_v19 }
  0x52   :  { %487 = vmatprep.subr.bf16.mxu1 %v2384_v20  ;;  %1599 = vmatmul.mubr.msk.bf16.gmra.mrb[8].mxu0 %vm131_vm0, %v1985_v11 }
  0x53   :  { %604 = vmatpush1.bf16.msra.mxu0 %v2370_v17  ;;  %206 = vmatprep.mubr.bf16.mxu0 %v2909_v0 }
  0x54   :  { %605 = vmatprep.subr.bf16.mxu0 %v2374_v18 }
  0x55   :  { %488 = vmatpush1.bf16.msra.mxu1 %v2386_v21 }
  0x56   :  { %489 = vmatprep.subr.bf16.mxu1 %v2388_v22 }
  0x57   :  { %606 = vmatpush1.bf16.msra.mxu0 %v2380_v19 }
  0x58   :  { %607 = vmatprep.subr.bf16.mxu0 %v2384_v20 }
  0x59   :  { %490 = vmatpush1.bf16.msra.mxu1 %v2398_v23 }
  0x5a   :  { %1767 = vmatprep.subr.bf16.mxu1 %v2911_v25  ;;  %1600 = vmatmul.mubr.msk.bf16.gmra.mrb[12].mxu0 %vm131_vm0, %v1987_v12 }
  0x5b   :  { %608 = vmatpush1.bf16.msra.mxu0 %v2386_v21  ;;  %627 = vmatprep.mubr.bf16.mxu0 %v2909_v0 }
  0x5c   :  { %508 = vmatmul.mubr.bf16.vlgmr.msra.gmra.mrb[8].mxu1 %v2909_v0  ;;  %609 = vmatprep.subr.bf16.mxu0 %v2388_v22 }
  0x5d   :  { %1768 = vmatpush3.bf16.msra.mxu1 %v2404_v24  ;;  %1783 = vmatprep.mubr.msk.bf16.mxu1 %vm2234_vm1, %v2911_v25 }
  0x5e   :  { %1769 = vmatprep.subr.bf16.mxu1 %v2911_v25 }
  0x5f   :  { %610 = vmatpush1.bf16.msra.mxu0 %v2398_v23 }
  0x60   :  { %710 = vmatprep.subr.bf16.mxu0 %v2328_v4 }
  0x61   :  { %1770 = vmatpush3.bf16.msra.mxu1 %v2412_v26 }
  0x62   :  { %1771 = vmatprep.subr.bf16.mxu1 %v2911_v25 }
  0x65   :  { %1772 = vmatpush3.bf16.msra.mxu1 %v2421_v27 }
  0x66   :  { %1773 = vmatprep.subr.bf16.mxu1 %v2911_v25 }
  0x69   :  { %1774 = vmatpush3.bf16.msra.mxu1 %v2429_v28 }
  0x6a   :  { %1775 = vmatprep.subr.bf16.mxu1 %v2911_v25 }
  0x6d   :  { %1776 = vmatpush3.bf16.msra.mxu1 %v2435_v29 }
  0x6e   :  { %1777 = vmatprep.subr.bf16.mxu1 %v2911_v25 }
  0x71   :  { %1778 = vmatpush3.bf16.msra.mxu1 %v2440_v30 }
  0x72   :  { %1779 = vmatprep.subr.bf16.mxu1 %v2911_v25 }
  0x75   :  { %1780 = vmatpush3.bf16.msra.mxu1 %v2444_v31 }
  0x76   :  { %1781 = vmatprep.subr.bf16.mxu1 %v2911_v25 }
  0x79   :  { %1782 = vmatpush3.bf16.msra.mxu1 %v2448_v32 }
  0x7a   :  { %1787 = vmatprep.subr.bf16.mxu1 %v2911_v25 }
  0x7c   :  { %1784 = vmatmul.mubr.bf16.vlgmr.msra.gmra.mrb[12].mxu1 %v2909_v0 }
  0x7d   :  { %1788 = vmatpush3.bf16.msra.mxu1 %v2404_v24  ;;  %1803 = vmatprep.mubr.msk.bf16.mxu1 %vm2234_vm1, %v2911_v25 }
  0x7e   :  { %1789 = vmatprep.subr.bf16.mxu1 %v2911_v25 }
  0x81   :  { %1790 = vmatpush3.bf16.msra.mxu1 %v2412_v26 }
  0x82   :  { %1791 = vmatprep.subr.bf16.mxu1 %v2911_v25 }
  0x85   :  { %1792 = vmatpush3.bf16.msra.mxu1 %v2421_v27 }
  0x86   :  { %1793 = vmatprep.subr.bf16.mxu1 %v2911_v25 }
  0x89   :  { %1794 = vmatpush3.bf16.msra.mxu1 %v2429_v28 }
  0x8a   :  { %1795 = vmatprep.subr.bf16.mxu1 %v2911_v25 }
  0x8d   :  { %1796 = vmatpush3.bf16.msra.mxu1 %v2435_v29 }
  0x8e   :  { %1797 = vmatprep.subr.bf16.mxu1 %v2911_v25 }
  0x91   :  { %1798 = vmatpush3.bf16.msra.mxu1 %v2440_v30 }
  0x92   :  { %1799 = vmatprep.subr.bf16.mxu1 %v2911_v25 }
  0x95   :  { %1800 = vmatpush3.bf16.msra.mxu1 %v2444_v31 }
  0x96   :  { %1801 = vmatprep.subr.bf16.mxu1 %v2911_v25 }
  0x99   :  { %1802 = vmatpush3.bf16.msra.mxu1 %v2448_v32 }
  0x9a   :  { %1807 = vmatprep.subr.bf16.mxu1 %v2911_v25 }
 0x10f   :  { %v1761_v38 = vpop.f32.mrb[0].mxu1 }
 0x110   :  { %v2481_v39 = vadd.f32 %v1761_v38, %v2478_v37  ;;  %v2483_v40 = vpop.f32.mrb[1].mxu1 }
 0x111   :  { %v1762_v41 = vpop.f32.mrb[2].mxu1 }
 0x112   :  { %v2486_v42 = vadd.f32 %v1762_v41, %v2478_v37  ;;  %v254_v43 = vpop.f32.mrb[3].mxu1 }
 0x113   :  { %v2489_v44 = vadd.f32 %v254_v43, %v2478_v37 }
 0x115   :  { %v178_v55 = vpop.f32.mrb[0].mxu0 }
 0x116   :  { %v180_v57 = vpop.f32.mrb[1].mxu0  ;;  %v179_v33 = vadd.f32 %v178_v55, %v83_v56 }
 0x117   :  { %v1765_v45 = vpop.f32.mrb[4].mxu1  ;;  %v182_v59 = vpop.f32.mrb[2].mxu0  ;;  %v181_v35 = vadd.f32 %v180_v57, %v87_v58 }
 0x118   :  { %v2492_v46 = vadd.f32 %v1765_v45, %v2478_v37  ;;  %v267_v47 = vpop.f32.mrb[5].mxu1  ;;  %v2505_v60 = vadd.f32 %v182_v59, %v83_v56  ;;  %v184_v61 = vpop.f32.mrb[3].mxu0 }
 0x119   :  { %v2495_v48 = vadd.f32 %v267_v47, %v2478_v37  ;;  %v1766_v49 = vpop.f32.mrb[6].mxu1  ;;  %v2507_v62 = vadd.f32 %v184_v61, %v87_v58 }
 0x11a   :  { %v2498_v50 = vadd.f32 %v1766_v49, %v2478_v37  ;;  %v270_v51 = vpop.f32.mrb[7].mxu1 }
 0x11b   :  { %v2501_v52 = vadd.f32 %v270_v51, %v2478_v37 }
 0x11c   :  { %2915 = vst [vmem:[#allocation18_spill] sm:$0xff] %v2498_v50 }
 0x11d   :  { %v188_v63 = vpop.f32.mrb[4].mxu0 }
 0x11e   :  { %v2509_v1 = vadd.f32 %v188_v63, %v83_v56  ;;  %v190_v2 = vpop.f32.mrb[5].mxu0 }
 0x11f   :  { %v2511_v3 = vadd.f32 %v190_v2, %v87_v58  ;;  %v192_v11 = vpop.f32.mrb[6].mxu0 }
 0x120   :  { %v2513_v12 = vadd.f32 %v192_v11, %v83_v56  ;;  %v194_v14 = vpop.f32.mrb[7].mxu0 }
 0x121   :  { %v2515_v15 = vadd.f32 %v194_v14, %v87_v58 }
 0x125   :  { %v198_v36 = vpop.f32.mrb[8].mxu0 }
 0x126   :  { %v2517_v41 = vadd.f32 %v198_v36, %v83_v56  ;;  %v200_v43 = vpop.f32.mrb[9].mxu0 }
 0x127   :  { %v2519_v49 = vadd.f32 %v200_v43, %v87_v58  ;;  %v202_v51 = vpop.f32.mrb[10].mxu0 }
 0x128   :  { %v2521_v59 = vadd.f32 %v202_v51, %v83_v56  ;;  %v204_v61 = vpop.f32.mrb[11].mxu0 }
 0x129   :  { %v2523_v11 = vadd.f32 %v204_v61, %v87_v58 }
 0x12d   :  { %v208_v55 = vpop.f32.mrb[12].mxu0 }
 0x12e   :  { %v2525_v57 = vadd.f32 %v208_v55, %v83_v56  ;;  %v210_v14 = vpop.f32.mrb[13].mxu0 }
 0x12f   :  { %v509_v38 = vpop.f32.mrb[8].mxu1  ;;  %v2527_v36 = vadd.f32 %v210_v14, %v87_v58 }
 0x130   :  { %v556_v45 = vadd.f32 %v509_v38, %v179_v33  ;;  %v511_v47 = vpop.f32.mrb[9].mxu1  ;;  %v212_v33 = vpop.f32.mrb[14].mxu0 }
 0x131   :  { %v557_v53 = vadd.f32 %v511_v47, %v181_v35  ;;  %v513_v54 = vpop.f32.mrb[10].mxu1  ;;  %v2529_v38 = vadd.f32 %v212_v33, %v83_v56  ;;  %v214_v43 = vpop.f32.mrb[15].mxu0 }
 0x132   :  { %v1629_v63 = vmul.f32 -1.442695, %v556_v45  ;;  %v514_v2 = vpop.f32.mrb[11].mxu1  ;;  %v2531_v35 = vadd.f32 %v214_v43, %v87_v58  ;;  %v2536_v45 = vld [vmem:[%s2904_s5] ss:$0 sm:$0xff]  ;;  %v252_v58 = vadd.f32 %v2483_v40, %v2478_v37  ;;  %s1640_s5 = sld [smem:[#allocation4 + $0x1]] }
 0x133   :  { %2916 = vst [vmem:[#allocation19_spill] sm:$0xff] %v2529_v38  ;;  %v1630_v51 = vmul.f32 -1.442695, %v557_v53 }
 0x134   :  { %2013 = vpow2.f32 %v1629_v63  ;;  %2917 = vst [vmem:[#allocation20_spill] sm:$0xff] %v2531_v35 }
 0x135   :  { %2015 = vpow2.f32 %v1630_v51 }
 0x13e   :  { %v2014_v47 = vpop.eup %2013 }
 0x13f   :  { %v564_v54 = vadd.f32 1.0, %v2014_v47  ;;  %v2016_v63 = vpop.eup %2015 }
 0x140   :  { %v565_v43 = vadd.f32 1.0, %v2016_v63 }
 0x141   :  { %2017 = vrcp.f32 %v564_v54  ;;  %v584_v54 = vstv %s583_s11 }
 0x142   :  { %vm2542_vm2 = vcmp.lt.s32.totalorder %v2472_v34, %v584_v54 }
 0x143   :  { %vm1632_vm3 = vmpackc.low %vm2542_vm2, %vm2542_vm2 }
 0x144   :  { %vm2112_vm11 = vmpackc.low %vm2235_vm10, %vm2542_vm2 }
 0x14b   :  { %v2018_v56 = vpop.eup %2017 }
 0x14f   :  { %v550_v61 = vpop.f32.mrb[12].mxu1 }
 0x150   :  { %v576_v2 = vadd.f32 %v2536_v45, %v550_v61  ;;  %v1785_v55 = vpop.f32.mrb[13].mxu1  ;;  %v2918_v61 = vmov 0 }
 0x151   :  { %v553_v14 = vpop.f32.mrb[14].mxu1  ;;  %v2919_v61 = vsel %vm2542_vm2, 4294967295, %v2918_v61 }
 0x152   :  { %v577_v33 = vmul.f32 %v2018_v56, %v576_v2  ;;  %v1786_v53 = vpop.f32.mrb[15].mxu1  ;;  %2920 = vst [vmem:[#allocation21_spill] sm:$0xff] %v2919_v61 }
 0x154   :  { %v578_v47 = vadd.f32 %v577_v33, %v252_v58 }
 0x156   :  { %2019 = vtanh.f32 %v578_v47 }
 0x157   :  { %2021 = vrcp.f32 %v565_v43 }
 0x160   :  { %v2020_v51 = vpop.eup %2019 }
 0x161   :  { %v580_v0 = vsub.f32 0.0, %v2020_v51  ;;  %v2022_v25 = vpop.eup %2021 }
 0x163   :  { %v581_v50 = vmul.f32 %v2022_v25, %v580_v0  ;;  %v2922_v0 = vmov 0.0   ;;  %v2923_v25 = vmov 0  }
 0x165   :  { %v2546_v55 = vadd.f32 %v2020_v51, %v581_v50 }
 0x167   :  { %2921 = vst [vmem:[#allocation22_spill] sm:$0xff] %v2546_v55  ;;  %v2554_v37 = vsel %vm2542_vm2, %v2546_v55, 0.0  ;;  %v1633_v40 = vpack.c.bf16 %v2546_v55, %v2546_v55 }
 0x168   :  { %587 = vst [vmem:[#allocation10] sm:$0xff] %v2554_v37 }
 0x169   :  { %1634 = vmatmul.mubr.msk.bf16.vlgmr.msra.gmra.mrb[16].mxu0 %vm1632_vm3, %v1633_v40  ;;  %1804 = vmatmul.mubr.msk.bf16.vlgmr.msra.gmra.mrb[16].mxu1 %vm1632_vm3, %v1633_v40 }
 0x16a   :  { %711 = vmatpush1.bf16.msra.mxu0 %v2330_v5  ;;  %1808 = vmatpush3.bf16.msra.mxu1 %v2404_v24 }
 0x16b   :  { %712 = vmatprep.subr.bf16.mxu0 %v2333_v6  ;;  %1809 = vmatprep.subr.bf16.mxu1 %v2922_v0 }
 0x16c   :  { %742 = vmatprep.mubr.bf16.mxu0 %v2923_v25  ;;  %1823 = vmatprep.mubr.msk.bf16.mxu1 %vm2234_vm1, %v2922_v0 }
 0x16e   :  { %713 = vmatpush1.bf16.msra.mxu0 %v2337_v7  ;;  %1810 = vmatpush3.bf16.msra.mxu1 %v2412_v26 }
 0x16f   :  { %714 = vmatprep.subr.bf16.mxu0 %v2340_v8  ;;  %1811 = vmatprep.subr.bf16.mxu1 %v2922_v0 }
 0x172   :  { %715 = vmatpush1.bf16.msra.mxu0 %v2342_v9  ;;  %1812 = vmatpush3.bf16.msra.mxu1 %v2421_v27 }
 0x173   :  { %716 = vmatprep.subr.bf16.mxu0 %v2345_v10  ;;  %1813 = vmatprep.subr.bf16.mxu1 %v2922_v0 }
 0x176   :  { %717 = vmatpush1.bf16.msra.mxu0 %v2355_v13  ;;  %1814 = vmatpush3.bf16.msra.mxu1 %v2429_v28 }
 0x177   :  { %718 = vmatprep.subr.bf16.mxu0 %v2367_v16  ;;  %1815 = vmatprep.subr.bf16.mxu1 %v2922_v0 }
 0x17a   :  { %719 = vmatpush1.bf16.msra.mxu0 %v2370_v17  ;;  %1816 = vmatpush3.bf16.msra.mxu1 %v2435_v29 }
 0x17b   :  { %720 = vmatprep.subr.bf16.mxu0 %v2374_v18  ;;  %1817 = vmatprep.subr.bf16.mxu1 %v2922_v0 }
 0x17e   :  { %721 = vmatpush1.bf16.msra.mxu0 %v2380_v19  ;;  %1818 = vmatpush3.bf16.msra.mxu1 %v2440_v30 }
 0x17f   :  { %722 = vmatprep.subr.bf16.mxu0 %v2384_v20  ;;  %1819 = vmatprep.subr.bf16.mxu1 %v2922_v0 }
 0x182   :  { %723 = vmatpush1.bf16.msra.mxu0 %v2386_v21  ;;  %1820 = vmatpush3.bf16.msra.mxu1 %v2444_v31 }
 0x183   :  { %724 = vmatprep.subr.bf16.mxu0 %v2388_v22  ;;  %1821 = vmatprep.subr.bf16.mxu1 %v2922_v0 }
 0x186   :  { %725 = vmatpush1.bf16.msra.mxu0 %v2398_v23  ;;  %1822 = vmatpush3.bf16.msra.mxu1 %v2448_v32 }
 0x187   :  { %825 = vmatprep.subr.bf16.mxu0 %v2328_v4  ;;  %1827 = vmatprep.subr.bf16.mxu1 %v2922_v0 }
 0x23c   :  { %v629_v50 = vpop.f32.mrb[16].mxu0  ;;  %v670_v63 = vpop.f32.mrb[16].mxu1 }
 0x23d   :  { %v676_v2 = vadd.f32 %v629_v50, %v2505_v60  ;;  %v631_v56 = vpop.f32.mrb[17].mxu0  ;;  %v1805_v14 = vpop.f32.mrb[17].mxu1  ;;  %v690_v55 = vadd.f32 %v2536_v45, %v670_v63 }
 0x23e   :  { %v677_v58 = vadd.f32 %v631_v56, %v2507_v62  ;;  %v633_v33 = vpop.f32.mrb[18].mxu0  ;;  %v673_v53 = vpop.f32.mrb[18].mxu1  ;;  %v698_v56 = vstv %s1640_s5 }
 0x23f   :  { %v1638_v43 = vmul.f32 -1.442695, %v676_v2  ;;  %v634_v47 = vpop.f32.mrb[19].mxu0  ;;  %v1806_v51 = vpop.f32.mrb[19].mxu1  ;;  %vm699_vm4 = vcmp.lt.s32.totalorder %v2472_v34, %v698_v56 }
 0x240   :  { %v1639_v54 = vmul.f32 -1.442695, %v677_v58 }
 0x241   :  { %2023 = vpow2.f32 %v1638_v43 }
 0x242   :  { %2025 = vpow2.f32 %v1639_v54 }
 0x24b   :  { %v2024_v40 = vpop.eup %2023 }
 0x24c   :  { %v684_v35 = vadd.f32 1.0, %v2024_v40  ;;  %v2026_v38 = vpop.eup %2025 }
 0x24d   :  { %v685_v14 = vadd.f32 1.0, %v2026_v38 }
 0x24e   :  { %2027 = vrcp.f32 %v684_v35 }
 0x258   :  { %v2028_v61 = vpop.eup %2027 }
 0x259   :  { %v691_v60 = vmul.f32 %v2028_v61, %v690_v55 }
 0x25b   :  { %v692_v50 = vadd.f32 %v691_v60, %v2489_v44 }
 0x25d   :  { %2029 = vtanh.f32 %v692_v50 }
 0x25e   :  { %2031 = vrcp.f32 %v685_v14 }
 0x267   :  { %v2030_v62 = vpop.eup %2029 }
 0x268   :  { %v694_v2 = vsub.f32 %v2554_v37, %v2030_v62  ;;  %v2032_v58 = vpop.eup %2031 }
 0x26a   :  { %v695_v33 = vmul.f32 %v2032_v58, %v694_v2 }
 0x26c   :  { %v696_v35 = vadd.f32 %v2030_v62, %v695_v33 }
 0x26e   :  { %v2601_v53 = vsel %vm699_vm4, %v696_v35, %v2554_v37 }
 0x26f   :  { %702 = vst [vmem:[#allocation10 + $0x8] sm:$0xff] %v2601_v53  ;;  %v709_v44 = vpack.c.bf16 %v2601_v53, %v2601_v53 }
 0x271   :  { %743 = vmatmul.mubr.bf16.vlgmr.msra.gmra.mrb[20].mxu0 %v709_v44  ;;  %1824 = vmatmul.mubr.bf16.vlgmr.msra.gmra.mrb[20].mxu1 %v709_v44 }
 0x272   :  { %826 = vmatpush1.bf16.msra.mxu0 %v2330_v5  ;;  %1828 = vmatpush3.bf16.msra.mxu1 %v2404_v24 }
 0x273   :  { %827 = vmatprep.subr.bf16.mxu0 %v2333_v6  ;;  %1829 = vmatprep.subr.bf16.mxu1 %v2922_v0 }
 0x274   :  { %857 = vmatprep.mubr.bf16.mxu0 %v2923_v25  ;;  %1843 = vmatprep.mubr.msk.bf16.mxu1 %vm2234_vm1, %v2922_v0 }
 0x276   :  { %828 = vmatpush1.bf16.msra.mxu0 %v2337_v7  ;;  %1830 = vmatpush3.bf16.msra.mxu1 %v2412_v26 }
 0x277   :  { %829 = vmatprep.subr.bf16.mxu0 %v2340_v8  ;;  %1831 = vmatprep.subr.bf16.mxu1 %v2922_v0 }
 0x27a   :  { %830 = vmatpush1.bf16.msra.mxu0 %v2342_v9  ;;  %1832 = vmatpush3.bf16.msra.mxu1 %v2421_v27 }
 0x27b   :  { %831 = vmatprep.subr.bf16.mxu0 %v2345_v10  ;;  %1833 = vmatprep.subr.bf16.mxu1 %v2922_v0 }
 0x27e   :  { %832 = vmatpush1.bf16.msra.mxu0 %v2355_v13  ;;  %1834 = vmatpush3.bf16.msra.mxu1 %v2429_v28 }
 0x27f   :  { %833 = vmatprep.subr.bf16.mxu0 %v2367_v16  ;;  %1835 = vmatprep.subr.bf16.mxu1 %v2922_v0 }
 0x282   :  { %834 = vmatpush1.bf16.msra.mxu0 %v2370_v17  ;;  %1836 = vmatpush3.bf16.msra.mxu1 %v2435_v29 }
 0x283   :  { %835 = vmatprep.subr.bf16.mxu0 %v2374_v18  ;;  %1837 = vmatprep.subr.bf16.mxu1 %v2922_v0 }
 0x286   :  { %836 = vmatpush1.bf16.msra.mxu0 %v2380_v19  ;;  %1838 = vmatpush3.bf16.msra.mxu1 %v2440_v30 }
 0x287   :  { %837 = vmatprep.subr.bf16.mxu0 %v2384_v20  ;;  %1839 = vmatprep.subr.bf16.mxu1 %v2922_v0 }
 0x28a   :  { %838 = vmatpush1.bf16.msra.mxu0 %v2386_v21  ;;  %1840 = vmatpush3.bf16.msra.mxu1 %v2444_v31 }
 0x28b   :  { %839 = vmatprep.subr.bf16.mxu0 %v2388_v22  ;;  %1841 = vmatprep.subr.bf16.mxu1 %v2922_v0 }
 0x28e   :  { %840 = vmatpush1.bf16.msra.mxu0 %v2398_v23  ;;  %1842 = vmatpush3.bf16.msra.mxu1 %v2448_v32 }
 0x28f   :  { %940 = vmatprep.subr.bf16.mxu0 %v2328_v4  ;;  %1847 = vmatprep.subr.bf16.mxu1 %v2922_v0 }
 0x344   :  { %v744_v38 = vpop.f32.mrb[20].mxu0  ;;  %v785_v61 = vpop.f32.mrb[20].mxu1 }
 0x345   :  { %v791_v55 = vadd.f32 %v744_v38, %v2509_v1  ;;  %v746_v37 = vpop.f32.mrb[21].mxu0  ;;  %v1825_v63 = vpop.f32.mrb[21].mxu1  ;;  %v805_v56 = vadd.f32 %v2536_v45, %v785_v61  ;;  %v813_v38 = vstv %s1643_s12 }
 0x346   :  { %v792_v43 = vadd.f32 %v746_v37, %v2511_v3  ;;  %v748_v47 = vpop.f32.mrb[22].mxu0  ;;  %v788_v51 = vpop.f32.mrb[22].mxu1  ;;  %vm814_vm5 = vcmp.lt.s32.totalorder %v2472_v34, %v813_v38 }
 0x347   :  { %v1641_v54 = vmul.f32 -1.442695, %v791_v55  ;;  %v749_v40 = vpop.f32.mrb[23].mxu0  ;;  %v1826_v60 = vpop.f32.mrb[23].mxu1 }
 0x348   :  { %v1642_v50 = vmul.f32 -1.442695, %v792_v43 }
 0x349   :  { %2033 = vpow2.f32 %v1641_v54 }
 0x34a   :  { %2035 = vpow2.f32 %v1642_v50 }
 0x353   :  { %v2034_v14 = vpop.eup %2033 }
 0x354   :  { %v799_v62 = vadd.f32 1.0, %v2034_v14  ;;  %v2036_v2 = vpop.eup %2035 }
 0x355   :  { %v800_v35 = vadd.f32 1.0, %v2036_v2 }
 0x356   :  { %2037 = vrcp.f32 %v799_v62 }
 0x360   :  { %v2038_v58 = vpop.eup %2037 }
 0x361   :  { %v806_v1 = vmul.f32 %v2038_v58, %v805_v56 }
 0x363   :  { %v807_v33 = vadd.f32 %v806_v1, %v2481_v39 }
 0x365   :  { %2039 = vtanh.f32 %v807_v33 }
 0x366   :  { %2041 = vrcp.f32 %v800_v35 }
 0x36f   :  { %v2040_v3 = vpop.eup %2039 }
 0x370   :  { %v809_v44 = vsub.f32 %v2601_v53, %v2040_v3  ;;  %v2042_v55 = vpop.eup %2041 }
 0x372   :  { %v810_v37 = vmul.f32 %v2042_v55, %v809_v44 }
 0x374   :  { %v811_v63 = vadd.f32 %v2040_v3, %v810_v37 }
 0x376   :  { %v2648_v43 = vsel %vm814_vm5, %v811_v63, %v2601_v53  ;;  %v928_v63 = vstv %s1646_s13 }
 0x377   :  { %817 = vst [vmem:[#allocation10 + $0x10] sm:$0xff] %v2648_v43  ;;  %v824_v39 = vpack.c.bf16 %v2648_v43, %v2648_v43  ;;  %vm929_vm6 = vcmp.lt.s32.totalorder %v2472_v34, %v928_v63  ;;  %v2774_v63 = vld [vmem:[#allocation5 + $0x48] ss:$12 sps:$4 sm:$0xff]  }
 0x379   :  { %858 = vmatmul.mubr.bf16.vlgmr.msra.gmra.mrb[24].mxu0 %v824_v39  ;;  %1844 = vmatmul.mubr.bf16.vlgmr.msra.gmra.mrb[24].mxu1 %v824_v39 }
 0x37a   :  { %941 = vmatpush1.bf16.msra.mxu0 %v2330_v5  ;;  %1848 = vmatpush3.bf16.msra.mxu1 %v2404_v24 }
 0x37b   :  { %942 = vmatprep.subr.bf16.mxu0 %v2333_v6  ;;  %1849 = vmatprep.subr.bf16.mxu1 %v2922_v0 }
 0x37c   :  { %972 = vmatprep.mubr.bf16.mxu0 %v2923_v25  ;;  %1863 = vmatprep.mubr.msk.bf16.mxu1 %vm2234_vm1, %v2922_v0 }
 0x37e   :  { %943 = vmatpush1.bf16.msra.mxu0 %v2337_v7  ;;  %1850 = vmatpush3.bf16.msra.mxu1 %v2412_v26 }
 0x37f   :  { %944 = vmatprep.subr.bf16.mxu0 %v2340_v8  ;;  %1851 = vmatprep.subr.bf16.mxu1 %v2922_v0 }
 0x382   :  { %945 = vmatpush1.bf16.msra.mxu0 %v2342_v9  ;;  %1852 = vmatpush3.bf16.msra.mxu1 %v2421_v27 }
 0x383   :  { %946 = vmatprep.subr.bf16.mxu0 %v2345_v10  ;;  %1853 = vmatprep.subr.bf16.mxu1 %v2922_v0 }
 0x386   :  { %947 = vmatpush1.bf16.msra.mxu0 %v2355_v13  ;;  %1854 = vmatpush3.bf16.msra.mxu1 %v2429_v28 }
 0x387   :  { %948 = vmatprep.subr.bf16.mxu0 %v2367_v16  ;;  %1855 = vmatprep.subr.bf16.mxu1 %v2922_v0 }
 0x38a   :  { %949 = vmatpush1.bf16.msra.mxu0 %v2370_v17  ;;  %1856 = vmatpush3.bf16.msra.mxu1 %v2435_v29 }
 0x38b   :  { %950 = vmatprep.subr.bf16.mxu0 %v2374_v18  ;;  %1857 = vmatprep.subr.bf16.mxu1 %v2922_v0 }
 0x38e   :  { %951 = vmatpush1.bf16.msra.mxu0 %v2380_v19  ;;  %1858 = vmatpush3.bf16.msra.mxu1 %v2440_v30 }
 0x38f   :  { %952 = vmatprep.subr.bf16.mxu0 %v2384_v20  ;;  %1859 = vmatprep.subr.bf16.mxu1 %v2922_v0 }
 0x392   :  { %953 = vmatpush1.bf16.msra.mxu0 %v2386_v21  ;;  %1860 = vmatpush3.bf16.msra.mxu1 %v2444_v31 }
 0x393   :  { %954 = vmatprep.subr.bf16.mxu0 %v2388_v22  ;;  %1861 = vmatprep.subr.bf16.mxu1 %v2922_v0 }
 0x396   :  { %955 = vmatpush1.bf16.msra.mxu0 %v2398_v23  ;;  %1862 = vmatpush3.bf16.msra.mxu1 %v2448_v32 }
 0x397   :  { %1055 = vmatprep.subr.bf16.mxu0 %v2328_v4  ;;  %1867 = vmatprep.subr.bf16.mxu1 %v2922_v0 }
 0x44c   :  { %v859_v61 = vpop.f32.mrb[24].mxu0  ;;  %v900_v47 = vpop.f32.mrb[24].mxu1 }
 0x44d   :  { %v906_v51 = vadd.f32 %v859_v61, %v2513_v12  ;;  %v861_v54 = vpop.f32.mrb[25].mxu0  ;;  %v1845_v40 = vpop.f32.mrb[25].mxu1  ;;  %v920_v3 = vadd.f32 %v2536_v45, %v900_v47 }
 0x44e   :  { %v907_v60 = vadd.f32 %v861_v54, %v2515_v15  ;;  %v863_v50 = vpop.f32.mrb[26].mxu0  ;;  %v903_v14 = vpop.f32.mrb[26].mxu1 }
 0x44f   :  { %v1644_v62 = vmul.f32 -1.442695, %v906_v51  ;;  %v864_v2 = vpop.f32.mrb[27].mxu0  ;;  %v1846_v56 = vpop.f32.mrb[27].mxu1 }
 0x450   :  { %v1645_v58 = vmul.f32 -1.442695, %v907_v60 }
 0x451   :  { %2043 = vpow2.f32 %v1644_v62 }
 0x452   :  { %2045 = vpow2.f32 %v1645_v58 }
 0x45b   :  { %v2044_v1 = vpop.eup %2043 }
 0x45c   :  { %v914_v33 = vadd.f32 1.0, %v2044_v1  ;;  %v2046_v35 = vpop.eup %2045  ;;  %v1043_v1 = vstv %s1649_s14 }
 0x45d   :  { %v915_v55 = vadd.f32 1.0, %v2046_v35  ;;  %vm1044_vm7 = vcmp.lt.s32.totalorder %v2472_v34, %v1043_v1  ;;  %v2110_v1 = vld [vmem:[#allocation5 + $0xac] ss:$12 sps:$4 sm:$0xff]  }
 0x45e   :  { %2047 = vrcp.f32 %v914_v33 }
 0x468   :  { %v2048_v44 = vpop.eup %2047 }
 0x469   :  { %v921_v12 = vmul.f32 %v2048_v44, %v920_v3 }
 0x46b   :  { %v922_v38 = vadd.f32 %v921_v12, %v2486_v42  ;;  %v2747_v12 = vld [vmem:[#allocation5] ss:$12 sps:$4 sm:$0xff]  }
 0x46d   :  { %2049 = vtanh.f32 %v922_v38  ;;  %v2751_v38 = vld [vmem:[#allocation5 + $0x1c] ss:$12 sps:$4 sm:$0xff]  }
 0x46e   :  { %2051 = vrcp.f32 %v915_v55  ;;  %v2758_v55 = vld [vmem:[#allocation5 + $0x18] ss:$12 sps:$4 sm:$0xff]  }
 0x477   :  { %v2050_v15 = vpop.eup %2049 }
 0x478   :  { %v924_v37 = vsub.f32 %v2648_v43, %v2050_v15  ;;  %v2052_v39 = vpop.eup %2051 }
 0x47a   :  { %v925_v61 = vmul.f32 %v2052_v39, %v924_v37  ;;  %v2770_v37 = vld [vmem:[#allocation5 + $0x4c] ss:$12 sps:$4 sm:$0xff]  }
 0x47b   :  { %v2782_v39 = vld [vmem:[#allocation5 + $0x60] ss:$12 sps:$4 sm:$0xff]  }
 0x47c   :  { %v926_v51 = vadd.f32 %v2050_v15, %v925_v61  ;;  %v2762_v15 = vld [vmem:[#allocation5 + $0x34] ss:$12 sps:$4 sm:$0xff]   ;;  %v2103_v61 = vld [vmem:[#allocation5 + $0x4] ss:$12 sps:$4 sm:$0xff]  }
 0x47e   :  { %v2695_v54 = vsel %vm929_vm6, %v926_v51, %v2648_v43 }
 0x47f   :  { %932 = vst [vmem:[#allocation10 + $0x18] sm:$0xff] %v2695_v54  ;;  %v939_v42 = vpack.c.bf16 %v2695_v54, %v2695_v54 }
 0x481   :  { %973 = vmatmul.mubr.bf16.vlgmr.msra.gmra.mrb[28].mxu0 %v939_v42  ;;  %1864 = vmatmul.mubr.bf16.vlgmr.msra.gmra.mrb[28].mxu1 %v939_v42 }
 0x482   :  { %1056 = vmatpush1.bf16.msra.mxu0 %v2330_v5  ;;  %1868 = vmatpush3.bf16.msra.mxu1 %v2404_v24 }
 0x483   :  { %1057 = vmatprep.subr.bf16.mxu0 %v2333_v6  ;;  %1869 = vmatprep.subr.bf16.mxu1 %v2922_v0 }
 0x484   :  { %1087 = vmatprep.mubr.bf16.mxu0 %v2923_v25  ;;  %1883 = vmatprep.mubr.msk.bf16.mxu1 %vm2234_vm1, %v2922_v0 }
 0x486   :  { %1058 = vmatpush1.bf16.msra.mxu0 %v2337_v7  ;;  %1870 = vmatpush3.bf16.msra.mxu1 %v2412_v26 }
 0x487   :  { %1059 = vmatprep.subr.bf16.mxu0 %v2340_v8  ;;  %1871 = vmatprep.subr.bf16.mxu1 %v2922_v0 }
 0x48a   :  { %1060 = vmatpush1.bf16.msra.mxu0 %v2342_v9  ;;  %1872 = vmatpush3.bf16.msra.mxu1 %v2421_v27 }
 0x48b   :  { %1061 = vmatprep.subr.bf16.mxu0 %v2345_v10  ;;  %1873 = vmatprep.subr.bf16.mxu1 %v2922_v0 }
 0x48e   :  { %1062 = vmatpush1.bf16.msra.mxu0 %v2355_v13  ;;  %1874 = vmatpush3.bf16.msra.mxu1 %v2429_v28 }
 0x48f   :  { %1063 = vmatprep.subr.bf16.mxu0 %v2367_v16  ;;  %1875 = vmatprep.subr.bf16.mxu1 %v2922_v0 }
 0x492   :  { %1064 = vmatpush1.bf16.msra.mxu0 %v2370_v17  ;;  %1876 = vmatpush3.bf16.msra.mxu1 %v2435_v29 }
 0x493   :  { %1065 = vmatprep.subr.bf16.mxu0 %v2374_v18  ;;  %1877 = vmatprep.subr.bf16.mxu1 %v2922_v0 }
 0x496   :  { %1066 = vmatpush1.bf16.msra.mxu0 %v2380_v19  ;;  %1878 = vmatpush3.bf16.msra.mxu1 %v2440_v30 }
 0x497   :  { %1067 = vmatprep.subr.bf16.mxu0 %v2384_v20  ;;  %1879 = vmatprep.subr.bf16.mxu1 %v2922_v0 }
 0x49a   :  { %1068 = vmatpush1.bf16.msra.mxu0 %v2386_v21  ;;  %1880 = vmatpush3.bf16.msra.mxu1 %v2444_v31 }
 0x49b   :  { %1069 = vmatprep.subr.bf16.mxu0 %v2388_v22  ;;  %1881 = vmatprep.subr.bf16.mxu1 %v2922_v0 }
 0x49e   :  { %1070 = vmatpush1.bf16.msra.mxu0 %v2398_v23  ;;  %1882 = vmatpush3.bf16.msra.mxu1 %v2448_v32 }
 0x49f   :  { %1170 = vmatprep.subr.bf16.mxu0 %v2328_v4  ;;  %1887 = vmatprep.subr.bf16.mxu1 %v2922_v0 }
 0x554   :  { %v974_v5 = vpop.f32.mrb[28].mxu0  ;;  %v1015_v6 = vpop.f32.mrb[28].mxu1 }
 0x555   :  { %v1021_v7 = vadd.f32 %v974_v5, %v2517_v41  ;;  %v976_v8 = vpop.f32.mrb[29].mxu0  ;;  %v1865_v9 = vpop.f32.mrb[29].mxu1  ;;  %v1035_v14 = vadd.f32 %v2536_v45, %v1015_v6 }
 0x556   :  { %v1022_v10 = vadd.f32 %v976_v8, %v2519_v49  ;;  %v978_v13 = vpop.f32.mrb[30].mxu0  ;;  %v1018_v16 = vpop.f32.mrb[30].mxu1 }
 0x557   :  { %v1647_v17 = vmul.f32 -1.442695, %v1021_v7  ;;  %v979_v18 = vpop.f32.mrb[31].mxu0  ;;  %v1866_v47 = vpop.f32.mrb[31].mxu1 }
 0x558   :  { %v1648_v40 = vmul.f32 -1.442695, %v1022_v10 }
 0x559   :  { %2053 = vpow2.f32 %v1647_v17 }
 0x55a   :  { %2055 = vpow2.f32 %v1648_v40 }
 0x563   :  { %v2054_v60 = vpop.eup %2053 }
 0x564   :  { %v1029_v50 = vadd.f32 1.0, %v2054_v60  ;;  %v2056_v4 = vpop.eup %2055 }
 0x565   :  { %v1030_v56 = vadd.f32 1.0, %v2056_v4 }
 0x566   :  { %2057 = vrcp.f32 %v1029_v50  ;;  %v1158_v50 = vstv %s1652_s0 }
 0x567   :  { %vm1159_vm8 = vcmp.lt.s32.totalorder %v2472_v34, %v1158_v50 }
 0x570   :  { %v2058_v62 = vpop.eup %2057 }
 0x571   :  { %v1036_v41 = vmul.f32 %v2058_v62, %v1035_v14 }
 0x573   :  { %v1037_v2 = vadd.f32 %v1036_v41, %v2495_v48 }
 0x575   :  { %2059 = vtanh.f32 %v1037_v2  ;;  %v2104_v2 = vld [vmem:[#allocation5 + $0x8] ss:$12 sps:$4 sm:$0xff]  }
 0x576   :  { %2061 = vrcp.f32 %v1030_v56  ;;  %v2105_v56 = vld [vmem:[#allocation5 + $0x20] ss:$12 sps:$4 sm:$0xff]  }
 0x57f   :  { %v2060_v49 = vpop.eup %2059 }
 0x580   :  { %v1039_v58 = vsub.f32 %v2695_v54, %v2060_v49  ;;  %v2062_v33 = vpop.eup %2061 }
 0x582   :  { %v1040_v35 = vmul.f32 %v2062_v33, %v1039_v58  ;;  %v2108_v58 = vld [vmem:[#allocation5 + $0x94] ss:$12 sps:$4 sm:$0xff]  }
 0x583   :  { %v2005_v33 = vld [vmem:[#allocation8] sm:$0xff]  }
 0x584   :  { %v1041_v3 = vadd.f32 %v2060_v49, %v1040_v35  ;;  %v2106_v49 = vld [vmem:[#allocation5 + $0x38] ss:$12 sps:$4 sm:$0xff]  }
 0x586   :  { %v2742_v44 = vsel %vm1044_vm7, %v1041_v3, %v2695_v54 }
 0x587   :  { %1047 = vst [vmem:[#allocation10 + $0x20] sm:$0xff] %v2742_v44  ;;  %v1054_v48 = vpack.c.bf16 %v2742_v44, %v2742_v44 }
 0x589   :  { %1088 = vmatmul.mubr.bf16.vlgmr.msra.gmra.mrb[32].mxu0 %v1054_v48  ;;  %1884 = vmatmul.mubr.bf16.vlgmr.msra.gmra.mrb[32].mxu1 %v1054_v48 }
 0x58a   :  { %1171 = vmatpush1.bf16.msra.mxu0 %v2747_v12  ;;  %1888 = vmatpush3.bf16.msra.mxu1 %v2404_v24  ;;  %v2766_v24 = vld [vmem:[#allocation5 + $0x30] ss:$12 sps:$4 sm:$0xff]  }
 0x58b   :  { %1172 = vmatprep.subr.bf16.mxu0 %v2751_v38  ;;  %1889 = vmatprep.subr.bf16.mxu1 %v2922_v0 }
 0x58c   :  { %1202 = vmatprep.mubr.bf16.mxu0 %v2923_v25  ;;  %1903 = vmatprep.mubr.msk.bf16.mxu1 %vm2234_vm1, %v2922_v0 }
 0x58e   :  { %1173 = vmatpush1.bf16.msra.mxu0 %v2758_v55  ;;  %1890 = vmatpush3.bf16.msra.mxu1 %v2412_v26  ;;  %v2778_v26 = vld [vmem:[#allocation5 + $0x64] ss:$12 sps:$4 sm:$0xff]  }
 0x58f   :  { %1174 = vmatprep.subr.bf16.mxu0 %v2762_v15  ;;  %1891 = vmatprep.subr.bf16.mxu1 %v2922_v0 }
 0x592   :  { %1175 = vmatpush1.bf16.msra.mxu0 %v2766_v24  ;;  %1892 = vmatpush3.bf16.msra.mxu1 %v2421_v27  ;;  %v2786_v27 = vld [vmem:[#allocation5 + $0x7c] ss:$12 sps:$4 sm:$0xff]  }
 0x593   :  { %1176 = vmatprep.subr.bf16.mxu0 %v2770_v37  ;;  %1893 = vmatprep.subr.bf16.mxu1 %v2922_v0 }
 0x596   :  { %1177 = vmatpush1.bf16.msra.mxu0 %v2774_v63  ;;  %1894 = vmatpush3.bf16.msra.mxu1 %v2429_v28 }
 0x597   :  { %1178 = vmatprep.subr.bf16.mxu0 %v2778_v26  ;;  %1895 = vmatprep.subr.bf16.mxu1 %v2922_v0 }
 0x59a   :  { %1179 = vmatpush1.bf16.msra.mxu0 %v2782_v39  ;;  %1896 = vmatpush3.bf16.msra.mxu1 %v2435_v29 }
 0x59b   :  { %1180 = vmatprep.subr.bf16.mxu0 %v2786_v27  ;;  %1897 = vmatprep.subr.bf16.mxu1 %v2922_v0 }
 0x59e   :  { %1181 = vmatpush1.bf16.msra.mxu0 %v2380_v19  ;;  %1898 = vmatpush3.bf16.msra.mxu1 %v2440_v30 }
 0x59f   :  { %1182 = vmatprep.subr.bf16.mxu0 %v2384_v20  ;;  %1899 = vmatprep.subr.bf16.mxu1 %v2922_v0 }
 0x5a2   :  { %1183 = vmatpush1.bf16.msra.mxu0 %v2386_v21  ;;  %1900 = vmatpush3.bf16.msra.mxu1 %v2444_v31 }
 0x5a3   :  { %1184 = vmatprep.subr.bf16.mxu0 %v2388_v22  ;;  %1901 = vmatprep.subr.bf16.mxu1 %v2922_v0 }
 0x5a6   :  { %1185 = vmatpush1.bf16.msra.mxu0 %v2398_v23  ;;  %1902 = vmatpush3.bf16.msra.mxu1 %v2448_v32 }
 0x5a7   :  { %1285 = vmatprep.subr.bf16.mxu0 %v2103_v61  ;;  %1907 = vmatprep.subr.bf16.mxu1 %v2922_v0 }
 0x65c   :  { %v1089_v19 = vpop.f32.mrb[32].mxu0  ;;  %v1130_v20 = vpop.f32.mrb[32].mxu1 }
 0x65d   :  { %v1136_v51 = vadd.f32 %v1089_v19, %v2521_v59  ;;  %v1091_v42 = vpop.f32.mrb[33].mxu0  ;;  %v1885_v21 = vpop.f32.mrb[33].mxu1  ;;  %v1150_v17 = vadd.f32 %v2536_v45, %v1130_v20 }
 0x65e   :  { %v1137_v5 = vadd.f32 %v1091_v42, %v2523_v11  ;;  %v1093_v6 = vpop.f32.mrb[34].mxu0  ;;  %v1133_v22 = vpop.f32.mrb[34].mxu1 }
 0x65f   :  { %v1650_v7 = vmul.f32 -1.442695, %v1136_v51  ;;  %v1094_v8 = vpop.f32.mrb[35].mxu0  ;;  %v1886_v9 = vpop.f32.mrb[35].mxu1  ;;  %v1273_v51 = vstv %s1655_s3  ;;  %v2006_v22 = vld [vmem:[#allocation8 + $0x8] sm:$0xff]  }
 0x660   :  { %v1651_v23 = vmul.f32 -1.442695, %v1137_v5  ;;  %vm1274_vm9 = vcmp.lt.s32.totalorder %v2472_v34, %v1273_v51  ;;  %v2925_v8 = vld [vmem:[#allocation22_spill] sm:$0xff] }
 0x661   :  { %2063 = vpow2.f32 %v1650_v7  ;;  %v2113_v9 = vpack.c.bf16 %v2601_v53, %v2925_v8  ;;  %v1402_v53 = vpack.c.bf16 %v2695_v54, %v2648_v43 }
 0x662   :  { %2065 = vpow2.f32 %v1651_v23  ;;  %v2007_v23 = vld [vmem:[#allocation8 + $0x10] sm:$0xff]  }
 0x66b   :  { %v2064_v10 = vpop.eup %2063 }
 0x66c   :  { %v1144_v13 = vadd.f32 1.0, %v2064_v10  ;;  %v2066_v16 = vpop.eup %2065  ;;  %v2008_v10 = vld [vmem:[#allocation8 + $0x18] sm:$0xff]  }
 0x66d   :  { %v1145_v40 = vadd.f32 1.0, %v2066_v16  ;;  %v2010_v16 = vld [vmem:[#allocation8 + $0x28] sm:$0xff]  }
 0x66e   :  { %2067 = vrcp.f32 %v1144_v13  ;;  %v2009_v13 = vld [vmem:[#allocation8 + $0x20] sm:$0xff]  }
 0x678   :  { %v2068_v18 = vpop.eup %2067 }
 0x679   :  { %v1151_v59 = vmul.f32 %v2068_v18, %v1150_v17  ;;  %v2011_v17 = vld [vmem:[#allocation8 + $0x30] sm:$0xff]   ;;  %v2012_v18 = vld [vmem:[#allocation8 + $0x38] sm:$0xff]  }
 0x67b   :  { %v1152_v47 = vadd.f32 %v1151_v59, %v2501_v52 }
 0x67d   :  { %2069 = vtanh.f32 %v1152_v47 }
 0x67e   :  { %2071 = vrcp.f32 %v1145_v40 }
 0x687   :  { %v2070_v11 = vpop.eup %2069 }
 0x688   :  { %v1154_v60 = vsub.f32 %v2742_v44, %v2070_v11  ;;  %v2072_v4 = vpop.eup %2071 }
 0x68a   :  { %v1155_v14 = vmul.f32 %v2072_v4, %v1154_v60 }
 0x68c   :  { %v1156_v62 = vadd.f32 %v2070_v11, %v1155_v14  ;;  %v2926_v11 = vld [vmem:[#allocation19_spill] sm:$0xff]  ;;  %v2927_v14 = vld [vmem:[#allocation20_spill] sm:$0xff] }
 0x68e   :  { %v2808_v41 = vsel %vm1159_vm8, %v1156_v62, %v2742_v44 }
 0x68f   :  { %1162 = vst [vmem:[#allocation10 + $0x28] sm:$0xff] %v2808_v41  ;;  %v1169_v52 = vpack.c.bf16 %v2808_v41, %v2808_v41  ;;  %v1403_v59 = vpack.c.bf16 %v2808_v41, %v2742_v44 }
 0x691   :  { %1203 = vmatmul.mubr.bf16.vlgmr.msra.gmra.mrb[36].mxu0 %v1169_v52  ;;  %1904 = vmatmul.mubr.bf16.vlgmr.msra.gmra.mrb[36].mxu1 %v1169_v52 }
 0x692   :  { %1286 = vmatpush1.bf16.msra.mxu0 %v2747_v12  ;;  %1908 = vmatpush3.bf16.msra.mxu1 %v2104_v2 }
 0x693   :  { %1287 = vmatprep.subr.bf16.mxu0 %v2751_v38  ;;  %1909 = vmatprep.subr.bf16.mxu1 %v2922_v0 }
 0x694   :  { %1317 = vmatprep.mubr.bf16.mxu0 %v2923_v25  ;;  %1923 = vmatprep.mubr.msk.bf16.mxu1 %vm2234_vm1, %v2922_v0  ;;  %v2107_v25 = vld [vmem:[#allocation5 + $0x78] ss:$12 sps:$4 sm:$0xff]  }
 0x696   :  { %1288 = vmatpush1.bf16.msra.mxu0 %v2758_v55  ;;  %1910 = vmatpush3.bf16.msra.mxu1 %v2105_v56 }
 0x697   :  { %1289 = vmatprep.subr.bf16.mxu0 %v2762_v15  ;;  %1911 = vmatprep.subr.bf16.mxu1 %v2922_v0 }
 0x69a   :  { %1290 = vmatpush1.bf16.msra.mxu0 %v2766_v24  ;;  %1912 = vmatpush3.bf16.msra.mxu1 %v2106_v49 }
 0x69b   :  { %1291 = vmatprep.subr.bf16.mxu0 %v2770_v37  ;;  %1913 = vmatprep.subr.bf16.mxu1 %v2922_v0 }
 0x69e   :  { %1292 = vmatpush1.bf16.msra.mxu0 %v2774_v63  ;;  %1914 = vmatpush3.bf16.msra.mxu1 %v2429_v28  ;;  %v2109_v28 = vld [vmem:[#allocation5 + $0x90] ss:$12 sps:$4 sm:$0xff]  }
 0x69f   :  { %1293 = vmatprep.subr.bf16.mxu0 %v2778_v26  ;;  %1915 = vmatprep.subr.bf16.mxu1 %v2922_v0 }
 0x6a2   :  { %1294 = vmatpush1.bf16.msra.mxu0 %v2782_v39  ;;  %1916 = vmatpush3.bf16.msra.mxu1 %v2435_v29  ;;  %v2111_v29 = vld [vmem:[#allocation5 + $0xa8] ss:$12 sps:$4 sm:$0xff]  }
 0x6a3   :  { %1295 = vmatprep.subr.bf16.mxu0 %v2786_v27  ;;  %1917 = vmatprep.subr.bf16.mxu1 %v2922_v0 }
 0x6a6   :  { %1296 = vmatpush1.bf16.msra.mxu0 %v2107_v25  ;;  %1918 = vmatpush3.bf16.msra.mxu1 %v2440_v30 }
 0x6a7   :  { %1297 = vmatprep.subr.bf16.mxu0 %v2108_v58  ;;  %1919 = vmatprep.subr.bf16.mxu1 %v2922_v0 }
 0x6aa   :  { %1298 = vmatpush1.bf16.msra.mxu0 %v2109_v28  ;;  %1920 = vmatpush3.bf16.msra.mxu1 %v2444_v31 }
 0x6ab   :  { %1299 = vmatprep.subr.bf16.mxu0 %v2110_v1  ;;  %1921 = vmatprep.subr.bf16.mxu1 %v2922_v0 }
 0x6ae   :  { %1300 = vmatpush1.bf16.msra.mxu0 %v2111_v29  ;;  %1922 = vmatpush3.bf16.msra.mxu1 %v2448_v32  ;;  %v1659_v29 = vld [vmem:[%s2906_s7] ss:$0 sm:$0xff]  ;;  %s2236_s7 = smov [#allocation10]  }
 0x6af   :  { %1927 = vmatprep.subr.bf16.mxu0 %v2005_v33  ;;  %s1554_s18 = sshll.u32 %s2236_s7, 4  ;;  %s1555_s18 = int_to_ptr.vmem [resolvable:$true] %s1554_s18 }
 0x6b0   :  { %s2171_s19 = scalar_lea.vmem %s1555_s18, 1024  ;;  %p2176_p8 = scmp.lt.s32.totalorder %s1555_s18, %s1555_s18 }
 0x6b1   :  { %p2172_p7 = scmp.ne.s32.totalorder %s1555_s18, %s2171_s19  ;;  %p2177_p9 = scmp.lt.s32.totalorder %s2171_s19, %s2171_s19 }
 0x6b3   :  { %p2178_p10 = por %p2177_p9, %p2176_p8 }
 0x6b5   :  { %p2179_p11 = pnand %p2178_p10, %p2172_p7 }
 0x764   :  { %v1204_v35 = vpop.f32.mrb[36].mxu0  ;;  %v1245_v30 = vpop.f32.mrb[36].mxu1 }
 0x765   :  { %v1251_v3 = vadd.f32 %v1204_v35, %v2525_v57  ;;  %v1206_v48 = vpop.f32.mrb[37].mxu0  ;;  %v1905_v12 = vpop.f32.mrb[37].mxu1  ;;  %v1265_v39 = vadd.f32 %v2536_v45, %v1245_v30 }
 0x766   :  { %v1252_v38 = vadd.f32 %v1206_v48, %v2527_v36  ;;  %v1208_v55 = vpop.f32.mrb[38].mxu0  ;;  %v1248_v31 = vpop.f32.mrb[38].mxu1 }
 0x767   :  { %v1653_v15 = vmul.f32 -1.442695, %v1251_v3  ;;  %v1209_v24 = vpop.f32.mrb[39].mxu0  ;;  %v1906_v37 = vpop.f32.mrb[39].mxu1 }
 0x768   :  { %v1654_v0 = vmul.f32 -1.442695, %v1252_v38 }
 0x769   :  { %2073 = vpow2.f32 %v1653_v15 }
 0x76a   :  { %2075 = vpow2.f32 %v1654_v0  ;;  %v1388_v0 = vstv %s1658_s17 }
 0x76b   :  { %vm1389_vm12 = vcmp.lt.s32.totalorder %v2472_v34, %v1388_v0 }
 0x773   :  { %v2074_v63 = vpop.eup %2073 }
 0x774   :  { %v1259_v26 = vadd.f32 1.0, %v2074_v63  ;;  %v2076_v32 = vpop.eup %2075 }
 0x775   :  { %v1260_v19 = vadd.f32 1.0, %v2076_v32 }
 0x776   :  { %2077 = vrcp.f32 %v1259_v26 }
 0x780   :  { %v2078_v27 = vpop.eup %2077 }
 0x781   :  { %v1266_v57 = vmul.f32 %v2078_v27, %v1265_v39 }
 0x783   :  { %v1267_v61 = vadd.f32 %v1266_v57, %v2492_v46 }
 0x785   :  { %2079 = vtanh.f32 %v1267_v61 }
 0x786   :  { %2081 = vrcp.f32 %v1260_v19 }
 0x78f   :  { %v2080_v36 = vpop.eup %2079 }
 0x790   :  { %v1269_v20 = vsub.f32 %v2808_v41, %v2080_v36  ;;  %v2082_v42 = vpop.eup %2081 }
 0x792   :  { %v1270_v21 = vmul.f32 %v2082_v42, %v1269_v20 }
 0x794   :  { %v1271_v5 = vadd.f32 %v2080_v36, %v1270_v21 }
 0x796   :  { %v2845_v6 = vsel %vm1274_vm9, %v1271_v5, %v2808_v41 }
 0x797   :  { %1277 = vst [vmem:[#allocation10 + $0x30] sm:$0xff] %v2845_v6  ;;  %v1284_v46 = vpack.c.bf16 %v2845_v6, %v2845_v6 }
 0x799   :  { %1318 = vmatmul.mubr.bf16.vlgmr.msra.gmra.mrb[40].mxu0 %v1284_v46  ;;  %1924 = vmatmul.mubr.bf16.vlgmr.msra.gmra.mrb[40].mxu1 %v1284_v46 }
 0x79a   :  { %1928 = vmatpush3.bf16.msra.mxu0 %v2005_v33  ;;  %2114 = vmatprep.mubr.msk.bf16.mxu0 %vm2112_vm11, %v2113_v9  ;;  %v2928_v33 = vld [vmem:[#allocation18_spill] sm:$0xff] }
 0x79b   :  { %1929 = vmatprep.subr.bf16.mxu0 %v2006_v22 }
 0x79e   :  { %1930 = vmatpush3.bf16.msra.mxu0 %v2006_v22 }
 0x79f   :  { %1931 = vmatprep.subr.bf16.mxu0 %v2007_v23 }
 0x7a2   :  { %1932 = vmatpush3.bf16.msra.mxu0 %v2007_v23 }
 0x7a3   :  { %1933 = vmatprep.subr.bf16.mxu0 %v2008_v10 }
 0x7a6   :  { %1934 = vmatpush3.bf16.msra.mxu0 %v2008_v10 }
 0x7a7   :  { %1935 = vmatprep.subr.bf16.mxu0 %v2009_v13 }
 0x7aa   :  { %1936 = vmatpush3.bf16.msra.mxu0 %v2009_v13 }
 0x7ab   :  { %1937 = vmatprep.subr.bf16.mxu0 %v2010_v16 }
 0x7ae   :  { %1938 = vmatpush3.bf16.msra.mxu0 %v2010_v16 }
 0x7af   :  { %1939 = vmatprep.subr.bf16.mxu0 %v2011_v17 }
 0x7b2   :  { %1940 = vmatpush3.bf16.msra.mxu0 %v2011_v17 }
 0x7b3   :  { %1941 = vmatprep.subr.bf16.mxu0 %v2012_v18 }
 0x7b6   :  { %1942 = vmatpush3.bf16.msra.mxu0 %v2012_v18 }
 0x7b9   :  { %1944 = vmatmul.mubr.bf16.vlgmr.msra.gmra.mrb[44].mxu0 %v1402_v53 }
 0x7ba   :  { %1947 = vmatprep.mubr.bf16.mxu0 %v1403_v59 }
 0x86c   :  { %v1319_v47 = vpop.f32.mrb[40].mxu0  ;;  %v1360_v40 = vpop.f32.mrb[40].mxu1 }
 0x86d   :  { %v1366_v60 = vadd.f32 %v1319_v47, %v2926_v11  ;;  %v1321_v50 = vpop.f32.mrb[41].mxu0  ;;  %v1925_v4 = vpop.f32.mrb[41].mxu1  ;;  %v1380_v41 = vadd.f32 %v2536_v45, %v1360_v40 }
 0x86e   :  { %v1367_v62 = vadd.f32 %v1321_v50, %v2927_v14  ;;  %v1323_v52 = vpop.f32.mrb[42].mxu0  ;;  %v1363_v2 = vpop.f32.mrb[42].mxu1 }
 0x86f   :  { %v1656_v56 = vmul.f32 -1.442695, %v1366_v60  ;;  %v1324_v49 = vpop.f32.mrb[43].mxu0  ;;  %v1926_v25 = vpop.f32.mrb[43].mxu1 }
 0x870   :  { %v1657_v43 = vmul.f32 -1.442695, %v1367_v62 }
 0x871   :  { %2083 = vpow2.f32 %v1656_v56 }
 0x872   :  { %2085 = vpow2.f32 %v1657_v43 }
 0x87b   :  { %v2084_v54 = vpop.eup %2083 }
 0x87c   :  { %v1374_v58 = vadd.f32 1.0, %v2084_v54  ;;  %v2086_v44 = vpop.eup %2085 }
 0x87d   :  { %v1375_v30 = vadd.f32 1.0, %v2086_v44 }
 0x87e   :  { %2087 = vrcp.f32 %v1374_v58 }
 0x888   :  { %v2088_v28 = vpop.eup %2087 }
 0x889   :  { %v1381_v1 = vmul.f32 %v2088_v28, %v1380_v41 }
 0x88b   :  { %v1382_v35 = vadd.f32 %v1381_v1, %v2928_v33 }
 0x88c   :  { %v1945_v3 = vpop.f32.mrb[44].mxu0 }
 0x88d   :  { %2089 = vtanh.f32 %v1382_v35  ;;  %v1519_v48 = vadd.f32 %v1945_v3, %v1659_v29  ;;  %v1510_v12 = vpop.f32.mrb[45].mxu0 }
 0x88e   :  { %v1511_v38 = vadd.f32 %v1659_v29, %v1510_v12  ;;  %v1946_v55 = vpop.f32.mrb[46].mxu0  ;;  %2091 = vrcp.f32 %v1375_v30 }
 0x88f   :  { %1543 = vst [vmem:[#allocation11 + $0x10] sm:$0xff] %v1519_v48  ;;  %v1522_v31 = vadd.f32 %v1946_v55, %v1659_v29  ;;  %v1513_v15 = vpop.f32.mrb[47].mxu0 }
 0x890   :  { %1541 = vst [vmem:[#allocation11] sm:$0xff] %v1511_v38  ;;  %v1514_v45 = vadd.f32 %v1659_v29, %v1513_v15 }
 0x891   :  { %1544 = vst [vmem:[#allocation11 + $0x18] sm:$0xff] %v1522_v31 }
 0x892   :  { %1542 = vst [vmem:[#allocation11 + $0x8] sm:$0xff] %v1514_v45 }
 0x897   :  { %v2090_v24 = vpop.eup %2089 }
 0x898   :  { %v1384_v37 = vsub.f32 %v2845_v6, %v2090_v24  ;;  %v2092_v63 = vpop.eup %2091 }
 0x89a   :  { %v1385_v26 = vmul.f32 %v2092_v63, %v1384_v37 }
 0x89c   :  { %v1386_v32 = vadd.f32 %v2090_v24, %v1385_v26 }
 0x89e   :  { %v1390_v39 = vsel %vm1389_vm12, %v1386_v32, %v2845_v6 }
 0x89f   :  { %1392 = vst [vmem:[#allocation10 + $0x38] sm:$0xff] %v1390_v39  ;;  %v1404_v27 = vpack.c.bf16 %v1390_v39, %v2845_v6 }
 0x8a1   :  { %1948 = vmatmul.mubr.bf16.gmra.mrb[48].mxu0 %v1404_v27 }
 0x8a2   :  { %2182 = shalt.err (!%p2179_p11)
}
 0x8a3   :  { %s2183_s22 = scalar_lea.hbm %s2907_s8, 1024 }
 0x8a4   :  { %p2184_p12 = scmp.ne.s32.totalorder %s2907_s8, %s2183_s22  ;;  %p2187_p13 = scmp.lt.u32.totalorder %s2183_s22, %s2907_s8 }
 0x8a6   :  { %p2189_p0 = pnand %p2187_p13, %p2184_p12 }
 0x8a8   :  { %2192 = shalt.err (!%p2189_p0)
}
 0x8a9   :  { %s2237_s26 = smov 128   ;;  %s2238_s27 = smov 8  }
 0x8aa   :  { %1560 = dma.vmem_to_hbm [thread:$0]  %s1555_s18, 1024, %s2907_s8, [#allocation7], %s2237_s26, %s2237_s26, %s2238_s27  }
 0x8ab   :  { %s2239_s30 = smov [#allocation11]  }
 0x8ac   :  { %s1566_s1 = sshll.u32 %s2239_s30, 4  ;;  %s1567_s1 = int_to_ptr.vmem [resolvable:$true] %s1566_s1 }
 0x8ad   :  { %s2193_s2 = scalar_lea.vmem %s1567_s1, 1024  ;;  %p2198_p2 = scmp.lt.s32.totalorder %s1567_s1, %s1567_s1 }
 0x8ae   :  { %p2194_p1 = scmp.ne.s32.totalorder %s1567_s1, %s2193_s2  ;;  %p2199_p3 = scmp.lt.s32.totalorder %s2193_s2, %s2193_s2 }
 0x8b0   :  { %p2200_p4 = por %p2199_p3, %p2198_p2 }
 0x8b2   :  { %p2201_p5 = pnand %p2200_p4, %p2194_p1 }
 0x974   :  { %v1949_v34 = vpop.f32.mrb[48].mxu0 }
 0x975   :  { %v1535_v57 = vadd.f32 %v1949_v34, %v1659_v29  ;;  %v1526_v61 = vpop.f32.mrb[49].mxu0 }
 0x976   :  { %v1527_v19 = vadd.f32 %v1659_v29, %v1526_v61  ;;  %v1950_v36 = vpop.f32.mrb[50].mxu0 }
 0x977   :  { %1547 = vst [vmem:[#allocation11 + $0x30] sm:$0xff] %v1535_v57  ;;  %v1538_v20 = vadd.f32 %v1950_v36, %v1659_v29  ;;  %v1529_v51 = vpop.f32.mrb[51].mxu0 }
 0x978   :  { %1545 = vst [vmem:[#allocation11 + $0x20] sm:$0xff] %v1527_v19  ;;  %v1530_v42 = vadd.f32 %v1659_v29, %v1529_v51 }
 0x979   :  { %1548 = vst [vmem:[#allocation11 + $0x38] sm:$0xff] %v1538_v20 }
 0x97a   :  { %1546 = vst [vmem:[#allocation11 + $0x28] sm:$0xff] %v1530_v42 }
 0x97b   :  { %2204 = shalt.err (!%p2201_p5)
}
 0x97c   :  { %s2205_s10 = scalar_lea.hbm %s2908_s9, 1024 }
 0x97d   :  { %p2206_p6 = scmp.ne.s32.totalorder %s2908_s9, %s2205_s10  ;;  %p2209_p7 = scmp.lt.u32.totalorder %s2205_s10, %s2908_s9 }
 0x97f   :  { %p2211_p8 = pnand %p2209_p7, %p2206_p6 }
 0x981   :  { %2214 = shalt.err (!%p2211_p8)
}
 0x982   :  { %1572 = dma.vmem_to_hbm [thread:$0]  %s1567_s1, 1024, %s2908_s9, [#allocation12], %s2237_s26, %s2237_s26, %s2238_s27  }
 0x983   :  { %2221 = dma.done.wait [#allocation7], 1024  }
 0x984   :  { %2222 = vsyncadd [#allocation7], 4294966272 }
 0x985   :  { %2223 = dma.done.wait [#allocation12], 1024  }
 0x986   :  { %2224 = vsyncadd [#allocation12], 4294966272 }
 0x987   :  { %1579 = vsyncpa [#allocation6], 1 }
 0x988   :  { %1580 = vsyncpa [#allocation9], 1 }
 0x989   :  { %1581 = vsyncpa [#allocation7], 1 }
 0x98a   :  { %1582 = vsyncpa [#allocation12], 1 }

</bundles_post_ra>
